<compile_context>
chip_gen: v7x
topology: tpu7x:2x2x1
jax: 0.10.0
libtpu: 0.0.40
codegen_flags: <defaults>
</compile_context>

<pallas_src>
import functools

import numpy as np
import jax
import jax.numpy as jnp
from jax.experimental import pallas as pl
from jax.experimental.pallas import tpu as pltpu

# ----------------------------------------------------------------------------
# Synthetic "cfg": a small YOLO-style network (2 detection scales).
# 'padding' already holds the effective Conv2d padding.
# ----------------------------------------------------------------------------
IMG_SIZE = 16                       # config.IMG_SIZE
N_CLASSES = 3
APS = 3                             # anchors_per_scale
ANCHORS = [(2.0, 3.0), (4.0, 5.0), (6.0, 8.0),     # scale 0 (grid 8)
           (3.0, 4.0), (7.0, 9.0), (10.0, 13.0)]   # scale 1 (grid 16)
DET_CH = (5 + N_CLASSES) * APS      # 24

BLOCKS = [
    {'type': 'convolutional', 'filters': 8,      'size': 3, 'stride': 1, 'padding': 1, 'bn': True,  'act': 'leaky'},   # 0  16x16
    {'type': 'convolutional', 'filters': 8,      'size': 3, 'stride': 1, 'padding': 1, 'bn': True,  'act': 'leaky'},   # 1  16x16 (routed later)
    {'type': 'convolutional', 'filters': 16,     'size': 3, 'stride': 2, 'padding': 1, 'bn': True,  'act': 'leaky'},   # 2   8x8
    {'type': 'convolutional', 'filters': 16,     'size': 1, 'stride': 1, 'padding': 0, 'bn': True,  'act': 'leaky'},   # 3   8x8
    {'type': 'convolutional', 'filters': 16,     'size': 3, 'stride': 1, 'padding': 1, 'bn': True,  'act': 'leaky'},   # 4   8x8
    {'type': 'shortcut',      'from': -3},                                                                             # 5   X + outputs[2]
    {'type': 'convolutional', 'filters': DET_CH, 'size': 1, 'stride': 1, 'padding': 0, 'bn': False, 'act': 'linear'},  # 6   8x8
    {'type': 'yolo'},                                                                                                  # 7   scale 0
    {'type': 'route',         'layers': [-3]},                                                                         # 8   outputs[5]
    {'type': 'convolutional', 'filters': 8,      'size': 1, 'stride': 1, 'padding': 0, 'bn': True,  'act': 'leaky'},   # 9   8x8
    {'type': 'upsample',      'stride': 2},                                                                            # 10  16x16
    {'type': 'route',         'layers': [-1, 1]},                                                                      # 11  cat(X, outputs[1])
    {'type': 'convolutional', 'filters': DET_CH, 'size': 1, 'stride': 1, 'padding': 0, 'bn': False, 'act': 'linear'},  # 12  16x16
    {'type': 'yolo'},                                                                                                  # 13  scale 1
]


# ----------------------------------------------------------------------------
# Pallas kernels
# ----------------------------------------------------------------------------
def _conv_kernel(*refs, leaky, has_res):
    """Lane-dense fused conv: out(F,TM) = w(F,K) @ patches(K,TM) + bias,
    then LeakyReLU(0.1), then optional fused residual add (post-activation)."""
    if has_res:
        w_ref, p_ref, b_ref, r_ref, o_ref = refs
    else:
        w_ref, p_ref, b_ref, o_ref = refs
        r_ref = None
    y = jnp.dot(w_ref[...], p_ref[...], preferred_element_type=jnp.float32)
    y = y + b_ref[...]                       # (F,1) broadcast along lanes
    if leaky:
        y = jnp.where(y > 0, y, 0.1 * y)
    if has_res:
        y = y + r_ref[...]
    o_ref[...] = y.astype(o_ref.dtype)


def _decode_kernel(x_ref, off_ref, anc_ref, o_ref, *, stride, n_classes):
    """YOLO head decode. x:(B, 5+nc, P), off/anc:(1,2,P), out:(B,6,P).
    Single full-block store (no sub-sublane-range partial stores)."""
    x = x_ref[...]
    xy = (jax.nn.sigmoid(x[:, 0:2, :]) + off_ref[...]) * stride
    wh = jnp.exp(x[:, 2:4, :]) * anc_ref[...]
    conf = jax.nn.sigmoid(x[:, 4:5, :])
    # argmax over class scores (sigmoid is monotone -> skip it for the argmax)
    best_val = x[:, 5:6, :]
    best_idx = jnp.zeros_like(best_val)
    for c in range(1, n_classes):            # static unroll, first-max ties
        cur = x[:, 5 + c:6 + c, :]
        upd = cur > best_val
        best_val = jnp.where(upd, cur, best_val)
        best_idx = jnp.where(upd, jnp.full_like(best_idx, float(c)), best_idx)
    o_ref[...] = jnp.concatenate([xy, wh, conf, best_idx],
                                 axis=1).astype(o_ref.dtype)


# ----------------------------------------------------------------------------
# Wrappers (JAX glue around the kernels). Activations are channel-major:
# (C, N, H, W), so the kernel's (F, N*OH*OW) output is already in layout.
# ----------------------------------------------------------------------------
def conv2d_bn_act(x_cm, w_folded, bias, stride, pad, leaky, residual=None):
    """Conv2d (+folded BN scale in weights) + bias + LeakyReLU (+ residual).
    x_cm: (C, N, H, W);  w_folded: (F, C, KH, KW);  residual: (F, N, OH, OW)."""
    C, N, H, W = x_cm.shape
    F, _, KH, KW = w_folded.shape
    OH = (H + 2 * pad - KH) // stride + 1
    OW = (W + 2 * pad - KW) // stride + 1
    M = N * OH * OW
    K = C * KH * KW

    xp = jnp.pad(x_cm, ((0, 0), (0, 0), (pad, pad), (pad, pad)))
    # im2col directly in (K, M) layout — no lane-moving transpose.
    taps = []
    for kh in range(KH):
        for kw in range(KW):
            taps.append(xp[:, :, kh:kh + (OH - 1) * stride + 1:stride,
                                 kw:kw + (OW - 1) * stride + 1:stride])  # (C,N,OH,OW)
    patches = jnp.stack(taps, axis=1).reshape(K, M)          # (K, M), lane = M

    w2 = w_folded.reshape(F, K)                               # (F, K)
    b2 = bias.reshape(F, 1)

    # Lane tiling: 128-wide blocks when possible (>=2 parallel blocks for the
    # 16x16 layers -> v7x dual-TC); otherwise one full-M block (M is small).
    TM = 128 if M % 128 == 0 else M
    nblk = M // TM

    has_res = residual is not None
    in_specs = [
        pl.BlockSpec((F, K), lambda i: (0, 0)),
        pl.BlockSpec((K, TM), lambda i: (0, i)),
        pl.BlockSpec((F, 1), lambda i: (0, 0)),
    ]
    args = [w2, patches, b2]
    if has_res:
        in_specs.append(pl.BlockSpec((F, TM), lambda i: (0, i)))
        args.append(residual.reshape(F, M))                   # free reshape (same layout)

    out = pl.pallas_call(
        functools.partial(_conv_kernel, leaky=leaky, has_res=has_res),
        out_shape=jax.ShapeDtypeStruct((F, M), jnp.float32),
        grid=(nblk,),
        in_specs=in_specs,
        out_specs=pl.BlockSpec((F, TM), lambda i: (0, i)),
        compiler_params=pltpu.CompilerParams(dimension_semantics=("parallel",)),
    )(*args)

    return out.reshape(F, N, OH, OW)                          # channel-major, no transpose


def _head_constants(G, aps, anchors_scale):
    gidx = np.arange(G)
    a, b = np.meshgrid(gidx, gidx)                    # numpy 'xy' indexing
    off = np.concatenate([a.reshape(-1, 1), b.reshape(-1, 1)], axis=1)
    off = np.tile(off, (1, aps)).reshape(-1, 2).astype(np.float32)   # (P, 2)
    anc = np.tile(np.asarray(anchors_scale, np.float32), (G * G, 1)) # (P, 2)
    return off, anc


def yolo_head_decode(X_cm, aps, n_classes, anchors_scale, img_size):
    """X_cm: (aps*(5+nc), N, G, G) channel-major detection map -> (N, P, 6)."""
    C, B, G, _ = X_cm.shape
    A = 5 + n_classes
    P = G * G * aps
    # channel c = anchor*A + attr ; target P index = (gy*G+gx)*aps + anchor
    Xr = X_cm.reshape(aps, A, B, G * G).transpose(2, 1, 3, 0).reshape(B, A, P)
    off, anc = _head_constants(G, aps, anchors_scale)
    off_t = jnp.asarray(off.T)[None]                                 # (1, 2, P)
    anc_t = jnp.asarray(anc.T)[None]                                 # (1, 2, P)
    stride = float(img_size) / G
    out = pl.pallas_call(
        functools.partial(_decode_kernel, stride=stride, n_classes=n_classes),
        out_shape=jax.ShapeDtypeStruct((B, 6, P), jnp.float32),
    )(Xr, off_t, anc_t)
    # Match the PyTorch module's (B, P, 6); a consumer could use (B, 6, P) directly.
    return out.transpose(0, 2, 1)


# ----------------------------------------------------------------------------
# Pure-JAX reference ops (for correctness check); also channel-major I/O.
# ----------------------------------------------------------------------------
def conv_ref(x_cm, w, scale, bias, stride, pad, leaky, residual=None):
    x = x_cm.transpose(1, 0, 2, 3)                                   # NCHW
    y = jax.lax.conv_general_dilated(
        x, w, (stride, stride), [(pad, pad), (pad, pad)],
        dimension_numbers=('NCHW', 'OIHW', 'NCHW'))
    y = y * scale[None, :, None, None] + bias[None, :, None, None]
    if leaky:
        y = jnp.where(y > 0, y, 0.1 * y)
    y = y.transpose(1, 0, 2, 3)                                      # channel-major
    if residual is not None:
        y = y + residual
    return y


def decode_ref(X_cm, aps, n_classes, anchors_scale, img_size):
    X = X_cm.transpose(1, 0, 2, 3)                                   # NCHW
    B = X.shape[0]
    A = 5 + n_classes
    G = X.shape[-1]
    P = G * G * aps
    Xr = X.reshape(B, A * aps, G * G).transpose(0, 2, 1).reshape(B, P, A)
    off, anc = _head_constants(G, aps, anchors_scale)
    stride = float(img_size) / G
    xy = (jax.nn.sigmoid(Xr[..., 0:2]) + off[None]) * stride
    wh = jnp.exp(Xr[..., 2:4]) * anc[None]
    conf = jax.nn.sigmoid(Xr[..., 4:5])
    cls = jax.nn.sigmoid(Xr[..., 5:])
    idx = jnp.argmax(cls, axis=-1).astype(jnp.float32)[..., None]
    return jnp.concatenate([xy, wh, conf, idx], axis=-1)


# ----------------------------------------------------------------------------
# Parameters (deterministic, synthetic) and network driver
# ----------------------------------------------------------------------------
def compute_needed(blocks):
    needed = set()
    for i, blk in enumerate(blocks):
        if blk['type'] == 'shortcut':
            needed.add(i + blk['from'])
        elif blk['type'] == 'route':
            layers = blk['layers']
            start = i + layers[0]
            end = layers[1] if len(layers) > 1 else 0
            needed.add(start if not end else end)
    return needed


def build_params(blocks, key, in_channels=3):
    params = {}
    prev = in_channels
    output_filters = []
    filters = prev
    for i, blk in enumerate(blocks):
        t = blk['type']
        if t == 'convolutional':
            F, K = blk['filters'], blk['size']
            k_w, k_g, k_b, k_m, k_v = jax.random.split(jax.random.fold_in(key, i), 5)
            w = 0.1 * jax.random.normal(k_w, (F, prev, K, K), jnp.float32)
            if blk['bn']:
                gamma = 1.0 + 0.1 * jax.random.normal(k_g, (F,), jnp.float32)
                beta = 0.05 * jax.random.normal(k_b, (F,), jnp.float32)
                mean = 0.1 * jax.random.normal(k_m, (F,), jnp.float32)
                var = 1.0 + 0.1 * jnp.abs(jax.random.normal(k_v, (F,), jnp.float32))
                scale = gamma / jnp.sqrt(var + 1e-5)   # folded BN (eval stats)
                bias = beta - mean * scale
            else:
                scale = jnp.ones((F,), jnp.float32)
                bias = 0.05 * jax.random.normal(k_b, (F,), jnp.float32)
            params[i] = {'w': w, 'scale': scale, 'bias': bias,
                         # scale folded into weights once, on the host
                         'w_folded': w * scale[:, None, None, None]}
            filters = F
        elif t == 'route':
            layers = blk['layers']
            start = i + layers[0]
            end = layers[1] if len(layers) > 1 else 0
            filters = output_filters[start] if not end else (
                output_filters[start] + output_filters[end])
        output_filters.append(filters)
        prev = filters
    return params


def yolo_forward(x_cm, params, use_pallas=True):
    """x_cm: channel-major input (C, N, H, W). Returns (N, P_total, 6)."""
    needed = compute_needed(BLOCKS)
    outputs = {}
    predictions = None
    scale_idx = 0
    X = x_cm
    for i, blk in enumerate(BLOCKS):
        t = blk['type']
        if t == 'convolutional':
            p = params[i]
            residual = None
            # Fuse a following darknet shortcut into this conv's epilogue.
            if i + 1 < len(BLOCKS) and BLOCKS[i + 1]['type'] == 'shortcut':
                residual = outputs[i + 1 + BLOCKS[i + 1]['from']]
            if use_pallas:
                X = conv2d_bn_act(X, p['w_folded'], p['bias'], blk['stride'],
                                  blk['padding'], blk['act'] == 'leaky', residual)
            else:
                X = conv_ref(X, p['w'], p['scale'], p['bias'], blk['stride'],
                             blk['padding'], blk['act'] == 'leaky', residual)
        elif t == 'upsample':
            s = blk['stride']
            X = jnp.repeat(jnp.repeat(X, s, axis=2), s, axis=3)   # nearest
        elif t == 'shortcut':
            pass  # already fused into the preceding conv kernel
        elif t == 'route':
            layers = blk['layers']
            start = i + layers[0]
            end = layers[1] if len(layers) > 1 else 0
            X = outputs[start] if not end else jnp.concatenate([X, outputs[end]], axis=0)
        elif t == 'yolo':
            anchors_scale = ANCHORS[scale_idx * APS:(scale_idx + 1) * APS]
            fn = yolo_head_decode if use_pallas else decode_ref
            pred = fn(X, APS, N_CLASSES, anchors_scale, IMG_SIZE)
            scale_idx += 1
            predictions = pred if predictions is None else jnp.concatenate(
                [predictions, pred], axis=1)
        if i in needed:
            outputs[i] = X
    return predictions


# ----------------------------------------------------------------------------
if __name__ == "__main__":
    key = jax.random.PRNGKey(0)
    k_param, k_x = jax.random.split(key)
    params = build_params(BLOCKS, k_param, in_channels=3)
    x_nchw = jax.random.normal(k_x, (2, 3, IMG_SIZE, IMG_SIZE), jnp.float32)
    x_cm = x_nchw.transpose(1, 0, 2, 3)          # channel-major (C, N, H, W)

    fwd = jax.jit(functools.partial(yolo_forward, use_pallas=True))
    ref_fwd = jax.jit(functools.partial(yolo_forward, use_pallas=False))

    out = jax.block_until_ready(fwd(x_cm, params))
    ref = jax.block_until_ready(ref_fwd(x_cm, params))

    assert out.shape == (2, (8 * 8 + 16 * 16) * APS, 6), out.shape
    np.testing.assert_allclose(np.asarray(out), np.asarray(ref),
                               rtol=1e-3, atol=1e-2)
    print("KERNEL_OK")
</pallas_src>

<mosaic_0001>
module attributes {stable_mosaic.version = 11 : i64} {
  func.func @_conv_kernel(%arg0: i32, %arg1: memref<8x27xf32, #tpu.memory_space<vmem>>, %arg2: memref<27x128xf32, #tpu.memory_space<vmem>>, %arg3: memref<8x1xf32, #tpu.memory_space<vmem>>, %arg4: memref<8x128xf32, #tpu.memory_space<vmem>>) attributes {dimension_semantics = [#tpu.dimension_semantics<parallel>], iteration_bounds = array<i64: 4>, scalar_prefetch = 0 : i64, scratch_operands = 0 : i64, tpu.core_type = #tpu.core_type<tc>, window_params = [{pipeline_mode = #tpu.pipeline_mode<synchronous>, transform_indices = @transform_0, window_bounds = array<i64: 8, 27>}, {transform_indices = @transform_1, window_bounds = array<i64: 27, 128>}, {pipeline_mode = #tpu.pipeline_mode<synchronous>, transform_indices = @transform_2, window_bounds = array<i64: 8, 1>}, {transform_indices = @transform_3, window_bounds = array<i64: 8, 128>}]} {
    %c0 = arith.constant 0 : index
    %c0_0 = arith.constant 0 : index
    %0 = vector.load %arg1[%c0, %c0_0] : memref<8x27xf32, #tpu.memory_space<vmem>>, vector<8x27xf32>
    %c0_1 = arith.constant 0 : index
    %c0_2 = arith.constant 0 : index
    %1 = vector.load %arg2[%c0_1, %c0_2] : memref<27x128xf32, #tpu.memory_space<vmem>>, vector<27x128xf32>
    %cst = arith.constant dense<0.000000e+00> : vector<8x128xf32>
    %2 = tpu.matmul %0, %1, %cst {dimension_numbers = #tpu.dot_dimension_numbers<[1], [0], [0], [1], [0, 0, 1, 1], [], []>} : vector<8x27xf32>, vector<27x128xf32>, vector<8x128xf32> -> vector<8x128xf32>
    %c0_3 = arith.constant 0 : index
    %c0_4 = arith.constant 0 : index
    %3 = vector.load %arg3[%c0_3, %c0_4] : memref<8x1xf32, #tpu.memory_space<vmem>>, vector<8x1xf32>
    %4 = vector.broadcast %3 : vector<8x1xf32> to vector<8x128xf32>
    %5 = arith.addf %2, %4 : vector<8x128xf32>
    %cst_5 = arith.constant 0.000000e+00 : f32
    %6 = vector.broadcast %cst_5 : f32 to vector<8x128xf32>
    %7 = arith.cmpf ogt, %5, %6 : vector<8x128xf32>
    %cst_6 = arith.constant 1.000000e-01 : f32
    %8 = vector.broadcast %cst_6 : f32 to vector<8x128xf32>
    %9 = arith.mulf %8, %5 : vector<8x128xf32>
    %10 = arith.select %7, %5, %9 : vector<8x128xi1>, vector<8x128xf32>
    %c0_7 = arith.constant 0 : index
    %c0_8 = arith.constant 0 : index
    %11 = vector.load %arg4[%c0_7, %c0_8] : memref<8x128xf32, #tpu.memory_space<vmem>>, vector<8x128xf32>
    tpu.vector_store %arg4[%c0_7, %c0_8], %10 {strides = array<i32>} : memref<8x128xf32, #tpu.memory_space<vmem>>, vector<8x128xf32>,
    return
  }
  func.func @transform_0(%arg0: i32) -> (i32, i32) {
    %c0_i32 = arith.constant 0 : i32
    %c0_i32_0 = arith.constant 0 : i32
    %c0_i32_1 = arith.constant 0 : i32
    return %c0_i32, %c0_i32_0 : i32, i32
  }
  func.func @transform_1(%arg0: i32) -> (i32, i32) {
    %c0_i32 = arith.constant 0 : i32
    %c0_i32_0 = arith.constant 0 : i32
    return %c0_i32, %arg0 : i32, i32
  }
  func.func @transform_2(%arg0: i32) -> (i32, i32) {
    %c0_i32 = arith.constant 0 : i32
    %c0_i32_0 = arith.constant 0 : i32
    %c0_i32_1 = arith.constant 0 : i32
    return %c0_i32, %c0_i32_0 : i32, i32
  }
  func.func @transform_3(%arg0: i32) -> (i32, i32) {
    %c0_i32 = arith.constant 0 : i32
    %c0_i32_0 = arith.constant 0 : i32
    return %c0_i32, %arg0 : i32, i32
  }
}

module attributes {stable_mosaic.version = 11 : i64} {
  func.func @_conv_kernel(%arg0: i32, %arg1: memref<8x72xf32, #tpu.memory_space<vmem>>, %arg2: memref<72x128xf32, #tpu.memory_space<vmem>>, %arg3: memref<8x1xf32, #tpu.memory_space<vmem>>, %arg4: memref<8x128xf32, #tpu.memory_space<vmem>>) attributes {dimension_semantics = [#tpu.dimension_semantics<parallel>], iteration_bounds = array<i64: 4>, scalar_prefetch = 0 : i64, scratch_operands = 0 : i64, tpu.core_type = #tpu.core_type<tc>, window_params = [{pipeline_mode = #tpu.pipeline_mode<synchronous>, transform_indices = @transform_0, window_bounds = array<i64: 8, 72>}, {transform_indices = @transform_1, window_bounds = array<i64: 72, 128>}, {pipeline_mode = #tpu.pipeline_mode<synchronous>, transform_indices = @transform_2, window_bounds = array<i64: 8, 1>}, {transform_indices = @transform_3, window_bounds = array<i64: 8, 128>}]} {
    %c0 = arith.constant 0 : index
    %c0_0 = arith.constant 0 : index
    %0 = vector.load %arg1[%c0, %c0_0] : memref<8x72xf32, #tpu.memory_space<vmem>>, vector<8x72xf32>
    %c0_1 = arith.constant 0 : index
    %c0_2 = arith.constant 0 : index
    %1 = vector.load %arg2[%c0_1, %c0_2] : memref<72x128xf32, #tpu.memory_space<vmem>>, vector<72x128xf32>
    %cst = arith.constant dense<0.000000e+00> : vector<8x128xf32>
    %2 = tpu.matmul %0, %1, %cst {dimension_numbers = #tpu.dot_dimension_numbers<[1], [0], [0], [1], [0, 0, 1, 1], [], []>} : vector<8x72xf32>, vector<72x128xf32>, vector<8x128xf32> -> vector<8x128xf32>
    %c0_3 = arith.constant 0 : index
    %c0_4 = arith.constant 0 : index
    %3 = vector.load %arg3[%c0_3, %c0_4] : memref<8x1xf32, #tpu.memory_space<vmem>>, vector<8x1xf32>
    %4 = vector.broadcast %3 : vector<8x1xf32> to vector<8x128xf32>
    %5 = arith.addf %2, %4 : vector<8x128xf32>
    %cst_5 = arith.constant 0.000000e+00 : f32
    %6 = vector.broadcast %cst_5 : f32 to vector<8x128xf32>
    %7 = arith.cmpf ogt, %5, %6 : vector<8x128xf32>
    %cst_6 = arith.constant 1.000000e-01 : f32
    %8 = vector.broadcast %cst_6 : f32 to vector<8x128xf32>
    %9 = arith.mulf %8, %5 : vector<8x128xf32>
    %10 = arith.select %7, %5, %9 : vector<8x128xi1>, vector<8x128xf32>
    %c0_7 = arith.constant 0 : index
    %c0_8 = arith.constant 0 : index
    %11 = vector.load %arg4[%c0_7, %c0_8] : memref<8x128xf32, #tpu.memory_space<vmem>>, vector<8x128xf32>
    tpu.vector_store %arg4[%c0_7, %c0_8], %10 {strides = array<i32>} : memref<8x128xf32, #tpu.memory_space<vmem>>, vector<8x128xf32>,
    return
  }
  func.func @transform_0(%arg0: i32) -> (i32, i32) {
    %c0_i32 = arith.constant 0 : i32
    %c0_i32_0 = arith.constant 0 : i32
    %c0_i32_1 = arith.constant 0 : i32
    return %c0_i32, %c0_i32_0 : i32, i32
  }
  func.func @transform_1(%arg0: i32) -> (i32, i32) {
    %c0_i32 = arith.constant 0 : i32
    %c0_i32_0 = arith.constant 0 : i32
    return %c0_i32, %arg0 : i32, i32
  }
  func.func @transform_2(%arg0: i32) -> (i32, i32) {
    %c0_i32 = arith.constant 0 : i32
    %c0_i32_0 = arith.constant 0 : i32
    %c0_i32_1 = arith.constant 0 : i32
    return %c0_i32, %c0_i32_0 : i32, i32
  }
  func.func @transform_3(%arg0: i32) -> (i32, i32) {
    %c0_i32 = arith.constant 0 : i32
    %c0_i32_0 = arith.constant 0 : i32
    return %c0_i32, %arg0 : i32, i32
  }
}

module attributes {stable_mosaic.version = 11 : i64} {
  func.func @_conv_kernel(%arg0: i32, %arg1: memref<16x72xf32, #tpu.memory_space<vmem>>, %arg2: memref<72x128xf32, #tpu.memory_space<vmem>>, %arg3: memref<16x1xf32, #tpu.memory_space<vmem>>, %arg4: memref<16x128xf32, #tpu.memory_space<vmem>>) attributes {dimension_semantics = [#tpu.dimension_semantics<parallel>], iteration_bounds = array<i64: 1>, scalar_prefetch = 0 : i64, scratch_operands = 0 : i64, tpu.core_type = #tpu.core_type<tc>, window_params = [{pipeline_mode = #tpu.pipeline_mode<synchronous>, transform_indices = @transform_0, window_bounds = array<i64: 16, 72>}, {transform_indices = @transform_1, window_bounds = array<i64: 72, 128>}, {pipeline_mode = #tpu.pipeline_mode<synchronous>, transform_indices = @transform_2, window_bounds = array<i64: 16, 1>}, {transform_indices = @transform_3, window_bounds = array<i64: 16, 128>}]} {
    %c0 = arith.constant 0 : index
    %c0_0 = arith.constant 0 : index
    %0 = vector.load %arg1[%c0, %c0_0] : memref<16x72xf32, #tpu.memory_space<vmem>>, vector<16x72xf32>
    %c0_1 = arith.constant 0 : index
    %c0_2 = arith.constant 0 : index
    %1 = vector.load %arg2[%c0_1, %c0_2] : memref<72x128xf32, #tpu.memory_space<vmem>>, vector<72x128xf32>
    %cst = arith.constant dense<0.000000e+00> : vector<16x128xf32>
    %2 = tpu.matmul %0, %1, %cst {dimension_numbers = #tpu.dot_dimension_numbers<[1], [0], [0], [1], [0, 0, 1, 1], [], []>} : vector<16x72xf32>, vector<72x128xf32>, vector<16x128xf32> -> vector<16x128xf32>
    %c0_3 = arith.constant 0 : index
    %c0_4 = arith.constant 0 : index
    %3 = vector.load %arg3[%c0_3, %c0_4] : memref<16x1xf32, #tpu.memory_space<vmem>>, vector<16x1xf32>
    %4 = vector.broadcast %3 : vector<16x1xf32> to vector<16x128xf32>
    %5 = arith.addf %2, %4 : vector<16x128xf32>
    %cst_5 = arith.constant 0.000000e+00 : f32
    %6 = vector.broadcast %cst_5 : f32 to vector<16x128xf32>
    %7 = arith.cmpf ogt, %5, %6 : vector<16x128xf32>
    %cst_6 = arith.constant 1.000000e-01 : f32
    %8 = vector.broadcast %cst_6 : f32 to vector<16x128xf32>
    %9 = arith.mulf %8, %5 : vector<16x128xf32>
    %10 = arith.select %7, %5, %9 : vector<16x128xi1>, vector<16x128xf32>
    %c0_7 = arith.constant 0 : index
    %c0_8 = arith.constant 0 : index
    %11 = vector.load %arg4[%c0_7, %c0_8] : memref<16x128xf32, #tpu.memory_space<vmem>>, vector<16x128xf32>
    tpu.vector_store %arg4[%c0_7, %c0_8], %10 {strides = array<i32>} : memref<16x128xf32, #tpu.memory_space<vmem>>, vector<16x128xf32>,
    return
  }
  func.func @transform_0(%arg0: i32) -> (i32, i32) {
    %c0_i32 = arith.constant 0 : i32
    %c0_i32_0 = arith.constant 0 : i32
    %c0_i32_1 = arith.constant 0 : i32
    return %c0_i32, %c0_i32_0 : i32, i32
  }
  func.func @transform_1(%arg0: i32) -> (i32, i32) {
    %c0_i32 = arith.constant 0 : i32
    %c0_i32_0 = arith.constant 0 : i32
    return %c0_i32, %arg0 : i32, i32
  }
  func.func @transform_2(%arg0: i32) -> (i32, i32) {
    %c0_i32 = arith.constant 0 : i32
    %c0_i32_0 = arith.constant 0 : i32
    %c0_i32_1 = arith.constant 0 : i32
    return %c0_i32, %c0_i32_0 : i32, i32
  }
  func.func @transform_3(%arg0: i32) -> (i32, i32) {
    %c0_i32 = arith.constant 0 : i32
    %c0_i32_0 = arith.constant 0 : i32
    return %c0_i32, %arg0 : i32, i32
  }
}

module attributes {stable_mosaic.version = 11 : i64} {
  func.func @_conv_kernel(%arg0: i32, %arg1: memref<16x16xf32, #tpu.memory_space<vmem>>, %arg2: memref<16x128xf32, #tpu.memory_space<vmem>>, %arg3: memref<16x1xf32, #tpu.memory_space<vmem>>, %arg4: memref<16x128xf32, #tpu.memory_space<vmem>>) attributes {dimension_semantics = [#tpu.dimension_semantics<parallel>], iteration_bounds = array<i64: 1>, scalar_prefetch = 0 : i64, scratch_operands = 0 : i64, tpu.core_type = #tpu.core_type<tc>, window_params = [{pipeline_mode = #tpu.pipeline_mode<synchronous>, transform_indices = @transform_0, window_bounds = array<i64: 16, 16>}, {transform_indices = @transform_1, window_bounds = array<i64: 16, 128>}, {pipeline_mode = #tpu.pipeline_mode<synchronous>, transform_indices = @transform_2, window_bounds = array<i64: 16, 1>}, {transform_indices = @transform_3, window_bounds = array<i64: 16, 128>}]} {
    %c0 = arith.constant 0 : index
    %c0_0 = arith.constant 0 : index
    %0 = vector.load %arg1[%c0, %c0_0] : memref<16x16xf32, #tpu.memory_space<vmem>>, vector<16x16xf32>
    %c0_1 = arith.constant 0 : index
    %c0_2 = arith.constant 0 : index
    %1 = vector.load %arg2[%c0_1, %c0_2] : memref<16x128xf32, #tpu.memory_space<vmem>>, vector<16x128xf32>
    %cst = arith.constant dense<0.000000e+00> : vector<16x128xf32>
    %2 = tpu.matmul %0, %1, %cst {dimension_numbers = #tpu.dot_dimension_numbers<[1], [0], [0], [1], [0, 0, 1, 1], [], []>} : vector<16x16xf32>, vector<16x128xf32>, vector<16x128xf32> -> vector<16x128xf32>
    %c0_3 = arith.constant 0 : index
    %c0_4 = arith.constant 0 : index
    %3 = vector.load %arg3[%c0_3, %c0_4] : memref<16x1xf32, #tpu.memory_space<vmem>>, vector<16x1xf32>
    %4 = vector.broadcast %3 : vector<16x1xf32> to vector<16x128xf32>
    %5 = arith.addf %2, %4 : vector<16x128xf32>
    %cst_5 = arith.constant 0.000000e+00 : f32
    %6 = vector.broadcast %cst_5 : f32 to vector<16x128xf32>
    %7 = arith.cmpf ogt, %5, %6 : vector<16x128xf32>
    %cst_6 = arith.constant 1.000000e-01 : f32
    %8 = vector.broadcast %cst_6 : f32 to vector<16x128xf32>
    %9 = arith.mulf %8, %5 : vector<16x128xf32>
    %10 = arith.select %7, %5, %9 : vector<16x128xi1>, vector<16x128xf32>
    %c0_7 = arith.constant 0 : index
    %c0_8 = arith.constant 0 : index
    %11 = vector.load %arg4[%c0_7, %c0_8] : memref<16x128xf32, #tpu.memory_space<vmem>>, vector<16x128xf32>
    tpu.vector_store %arg4[%c0_7, %c0_8], %10 {strides = array<i32>} : memref<16x128xf32, #tpu.memory_space<vmem>>, vector<16x128xf32>,
    return
  }
  func.func @transform_0(%arg0: i32) -> (i32, i32) {
    %c0_i32 = arith.constant 0 : i32
    %c0_i32_0 = arith.constant 0 : i32
    %c0_i32_1 = arith.constant 0 : i32
    return %c0_i32, %c0_i32_0 : i32, i32
  }
  func.func @transform_1(%arg0: i32) -> (i32, i32) {
    %c0_i32 = arith.constant 0 : i32
    %c0_i32_0 = arith.constant 0 : i32
    return %c0_i32, %arg0 : i32, i32
  }
  func.func @transform_2(%arg0: i32) -> (i32, i32) {
    %c0_i32 = arith.constant 0 : i32
    %c0_i32_0 = arith.constant 0 : i32
    %c0_i32_1 = arith.constant 0 : i32
    return %c0_i32, %c0_i32_0 : i32, i32
  }
  func.func @transform_3(%arg0: i32) -> (i32, i32) {
    %c0_i32 = arith.constant 0 : i32
    %c0_i32_0 = arith.constant 0 : i32
    return %c0_i32, %arg0 : i32, i32
  }
}

module attributes {stable_mosaic.version = 11 : i64} {
  func.func @_conv_kernel(%arg0: i32, %arg1: memref<16x144xf32, #tpu.memory_space<vmem>>, %arg2: memref<144x128xf32, #tpu.memory_space<vmem>>, %arg3: memref<16x1xf32, #tpu.memory_space<vmem>>, %arg4: memref<16x128xf32, #tpu.memory_space<vmem>>, %arg5: memref<16x128xf32, #tpu.memory_space<vmem>>) attributes {dimension_semantics = [#tpu.dimension_semantics<parallel>], iteration_bounds = array<i64: 1>, scalar_prefetch = 0 : i64, scratch_operands = 0 : i64, tpu.core_type = #tpu.core_type<tc>, window_params = [{pipeline_mode = #tpu.pipeline_mode<synchronous>, transform_indices = @transform_0, window_bounds = array<i64: 16, 144>}, {transform_indices = @transform_1, window_bounds = array<i64: 144, 128>}, {pipeline_mode = #tpu.pipeline_mode<synchronous>, transform_indices = @transform_2, window_bounds = array<i64: 16, 1>}, {transform_indices = @transform_3, window_bounds = array<i64: 16, 128>}, {transform_indices = @transform_4, window_bounds = array<i64: 16, 128>}]} {
    %c0 = arith.constant 0 : index
    %c0_0 = arith.constant 0 : index
    %0 = vector.load %arg1[%c0, %c0_0] : memref<16x144xf32, #tpu.memory_space<vmem>>, vector<16x144xf32>
    %c0_1 = arith.constant 0 : index
    %c0_2 = arith.constant 0 : index
    %1 = vector.load %arg2[%c0_1, %c0_2] : memref<144x128xf32, #tpu.memory_space<vmem>>, vector<144x128xf32>
    %cst = arith.constant dense<0.000000e+00> : vector<16x128xf32>
    %2 = tpu.matmul %0, %1, %cst {dimension_numbers = #tpu.dot_dimension_numbers<[1], [0], [0], [1], [0, 0, 1, 1], [], []>} : vector<16x144xf32>, vector<144x128xf32>, vector<16x128xf32> -> vector<16x128xf32>
    %c0_3 = arith.constant 0 : index
    %c0_4 = arith.constant 0 : index
    %3 = vector.load %arg3[%c0_3, %c0_4] : memref<16x1xf32, #tpu.memory_space<vmem>>, vector<16x1xf32>
    %4 = vector.broadcast %3 : vector<16x1xf32> to vector<16x128xf32>
    %5 = arith.addf %2, %4 : vector<16x128xf32>
    %cst_5 = arith.constant 0.000000e+00 : f32
    %6 = vector.broadcast %cst_5 : f32 to vector<16x128xf32>
    %7 = arith.cmpf ogt, %5, %6 : vector<16x128xf32>
    %cst_6 = arith.constant 1.000000e-01 : f32
    %8 = vector.broadcast %cst_6 : f32 to vector<16x128xf32>
    %9 = arith.mulf %8, %5 : vector<16x128xf32>
    %10 = arith.select %7, %5, %9 : vector<16x128xi1>, vector<16x128xf32>
    %c0_7 = arith.constant 0 : index
    %c0_8 = arith.constant 0 : index
    %11 = vector.load %arg4[%c0_7, %c0_8] : memref<16x128xf32, #tpu.memory_space<vmem>>, vector<16x128xf32>
    %12 = arith.addf %10, %11 : vector<16x128xf32>
    %c0_9 = arith.constant 0 : index
    %c0_10 = arith.constant 0 : index
    %13 = vector.load %arg5[%c0_9, %c0_10] : memref<16x128xf32, #tpu.memory_space<vmem>>, vector<16x128xf32>
    tpu.vector_store %arg5[%c0_9, %c0_10], %12 {strides = array<i32>} : memref<16x128xf32, #tpu.memory_space<vmem>>, vector<16x128xf32>,
    return
  }
  func.func @transform_0(%arg0: i32) -> (i32, i32) {
    %c0_i32 = arith.constant 0 : i32
    %c0_i32_0 = arith.constant 0 : i32
    %c0_i32_1 = arith.constant 0 : i32
    return %c0_i32, %c0_i32_0 : i32, i32
  }
  func.func @transform_1(%arg0: i32) -> (i32, i32) {
    %c0_i32 = arith.constant 0 : i32
    %c0_i32_0 = arith.constant 0 : i32
    return %c0_i32, %arg0 : i32, i32
  }
  func.func @transform_2(%arg0: i32) -> (i32, i32) {
    %c0_i32 = arith.constant 0 : i32
    %c0_i32_0 = arith.constant 0 : i32
    %c0_i32_1 = arith.constant 0 : i32
    return %c0_i32, %c0_i32_0 : i32, i32
  }
  func.func @transform_3(%arg0: i32) -> (i32, i32) {
    %c0_i32 = arith.constant 0 : i32
    %c0_i32_0 = arith.constant 0 : i32
    return %c0_i32, %arg0 : i32, i32
  }
  func.func @transform_4(%arg0: i32) -> (i32, i32) {
    %c0_i32 = arith.constant 0 : i32
    %c0_i32_0 = arith.constant 0 : i32
    return %c0_i32, %arg0 : i32, i32
  }
}

module attributes {stable_mosaic.version = 11 : i64} {
  func.func @_conv_kernel(%arg0: i32, %arg1: memref<8x16xf32, #tpu.memory_space<vmem>>, %arg2: memref<16x128xf32, #tpu.memory_space<vmem>>, %arg3: memref<8x1xf32, #tpu.memory_space<vmem>>, %arg4: memref<8x128xf32, #tpu.memory_space<vmem>>) attributes {dimension_semantics = [#tpu.dimension_semantics<parallel>], iteration_bounds = array<i64: 1>, scalar_prefetch = 0 : i64, scratch_operands = 0 : i64, tpu.core_type = #tpu.core_type<tc>, window_params = [{pipeline_mode = #tpu.pipeline_mode<synchronous>, transform_indices = @transform_0, window_bounds = array<i64: 8, 16>}, {transform_indices = @transform_1, window_bounds = array<i64: 16, 128>}, {pipeline_mode = #tpu.pipeline_mode<synchronous>, transform_indices = @transform_2, window_bounds = array<i64: 8, 1>}, {transform_indices = @transform_3, window_bounds = array<i64: 8, 128>}]} {
    %c0 = arith.constant 0 : index
    %c0_0 = arith.constant 0 : index
    %0 = vector.load %arg1[%c0, %c0_0] : memref<8x16xf32, #tpu.memory_space<vmem>>, vector<8x16xf32>
    %c0_1 = arith.constant 0 : index
    %c0_2 = arith.constant 0 : index
    %1 = vector.load %arg2[%c0_1, %c0_2] : memref<16x128xf32, #tpu.memory_space<vmem>>, vector<16x128xf32>
    %cst = arith.constant dense<0.000000e+00> : vector<8x128xf32>
    %2 = tpu.matmul %0, %1, %cst {dimension_numbers = #tpu.dot_dimension_numbers<[1], [0], [0], [1], [0, 0, 1, 1], [], []>} : vector<8x16xf32>, vector<16x128xf32>, vector<8x128xf32> -> vector<8x128xf32>
    %c0_3 = arith.constant 0 : index
    %c0_4 = arith.constant 0 : index
    %3 = vector.load %arg3[%c0_3, %c0_4] : memref<8x1xf32, #tpu.memory_space<vmem>>, vector<8x1xf32>
    %4 = vector.broadcast %3 : vector<8x1xf32> to vector<8x128xf32>
    %5 = arith.addf %2, %4 : vector<8x128xf32>
    %cst_5 = arith.constant 0.000000e+00 : f32
    %6 = vector.broadcast %cst_5 : f32 to vector<8x128xf32>
    %7 = arith.cmpf ogt, %5, %6 : vector<8x128xf32>
    %cst_6 = arith.constant 1.000000e-01 : f32
    %8 = vector.broadcast %cst_6 : f32 to vector<8x128xf32>
    %9 = arith.mulf %8, %5 : vector<8x128xf32>
    %10 = arith.select %7, %5, %9 : vector<8x128xi1>, vector<8x128xf32>
    %c0_7 = arith.constant 0 : index
    %c0_8 = arith.constant 0 : index
    %11 = vector.load %arg4[%c0_7, %c0_8] : memref<8x128xf32, #tpu.memory_space<vmem>>, vector<8x128xf32>
    tpu.vector_store %arg4[%c0_7, %c0_8], %10 {strides = array<i32>} : memref<8x128xf32, #tpu.memory_space<vmem>>, vector<8x128xf32>,
    return
  }
  func.func @transform_0(%arg0: i32) -> (i32, i32) {
    %c0_i32 = arith.constant 0 : i32
    %c0_i32_0 = arith.constant 0 : i32
    %c0_i32_1 = arith.constant 0 : i32
    return %c0_i32, %c0_i32_0 : i32, i32
  }
  func.func @transform_1(%arg0: i32) -> (i32, i32) {
    %c0_i32 = arith.constant 0 : i32
    %c0_i32_0 = arith.constant 0 : i32
    return %c0_i32, %arg0 : i32, i32
  }
  func.func @transform_2(%arg0: i32) -> (i32, i32) {
    %c0_i32 = arith.constant 0 : i32
    %c0_i32_0 = arith.constant 0 : i32
    %c0_i32_1 = arith.constant 0 : i32
    return %c0_i32, %c0_i32_0 : i32, i32
  }
  func.func @transform_3(%arg0: i32) -> (i32, i32) {
    %c0_i32 = arith.constant 0 : i32
    %c0_i32_0 = arith.constant 0 : i32
    return %c0_i32, %arg0 : i32, i32
  }
}

module attributes {stable_mosaic.version = 11 : i64} {
  func.func @_conv_kernel(%arg0: i32, %arg1: memref<24x16xf32, #tpu.memory_space<vmem>>, %arg2: memref<16x128xf32, #tpu.memory_space<vmem>>, %arg3: memref<24x1xf32, #tpu.memory_space<vmem>>, %arg4: memref<24x128xf32, #tpu.memory_space<vmem>>) attributes {dimension_semantics = [#tpu.dimension_semantics<parallel>], iteration_bounds = array<i64: 4>, scalar_prefetch = 0 : i64, scratch_operands = 0 : i64, tpu.core_type = #tpu.core_type<tc>, window_params = [{pipeline_mode = #tpu.pipeline_mode<synchronous>, transform_indices = @transform_0, window_bounds = array<i64: 24, 16>}, {transform_indices = @transform_1, window_bounds = array<i64: 16, 128>}, {pipeline_mode = #tpu.pipeline_mode<synchronous>, transform_indices = @transform_2, window_bounds = array<i64: 24, 1>}, {transform_indices = @transform_3, window_bounds = array<i64: 24, 128>}]} {
    %c0 = arith.constant 0 : index
    %c0_0 = arith.constant 0 : index
    %0 = vector.load %arg1[%c0, %c0_0] : memref<24x16xf32, #tpu.memory_space<vmem>>, vector<24x16xf32>
    %c0_1 = arith.constant 0 : index
    %c0_2 = arith.constant 0 : index
    %1 = vector.load %arg2[%c0_1, %c0_2] : memref<16x128xf32, #tpu.memory_space<vmem>>, vector<16x128xf32>
    %cst = arith.constant dense<0.000000e+00> : vector<24x128xf32>
    %2 = tpu.matmul %0, %1, %cst {dimension_numbers = #tpu.dot_dimension_numbers<[1], [0], [0], [1], [0, 0, 1, 1], [], []>} : vector<24x16xf32>, vector<16x128xf32>, vector<24x128xf32> -> vector<24x128xf32>
    %c0_3 = arith.constant 0 : index
    %c0_4 = arith.constant 0 : index
    %3 = vector.load %arg3[%c0_3, %c0_4] : memref<24x1xf32, #tpu.memory_space<vmem>>, vector<24x1xf32>
    %4 = vector.broadcast %3 : vector<24x1xf32> to vector<24x128xf32>
    %5 = arith.addf %2, %4 : vector<24x128xf32>
    %c0_5 = arith.constant 0 : index
    %c0_6 = arith.constant 0 : index
    %6 = vector.load %arg4[%c0_5, %c0_6] : memref<24x128xf32, #tpu.memory_space<vmem>>, vector<24x128xf32>
    tpu.vector_store %arg4[%c0_5, %c0_6], %5 {strides = array<i32>} : memref<24x128xf32, #tpu.memory_space<vmem>>, vector<24x128xf32>,
    return
  }
  func.func @transform_0(%arg0: i32) -> (i32, i32) {
    %c0_i32 = arith.constant 0 : i32
    %c0_i32_0 = arith.constant 0 : i32
    %c0_i32_1 = arith.constant 0 : i32
    return %c0_i32, %c0_i32_0 : i32, i32
  }
  func.func @transform_1(%arg0: i32) -> (i32, i32) {
    %c0_i32 = arith.constant 0 : i32
    %c0_i32_0 = arith.constant 0 : i32
    return %c0_i32, %arg0 : i32, i32
  }
  func.func @transform_2(%arg0: i32) -> (i32, i32) {
    %c0_i32 = arith.constant 0 : i32
    %c0_i32_0 = arith.constant 0 : i32
    %c0_i32_1 = arith.constant 0 : i32
    return %c0_i32, %c0_i32_0 : i32, i32
  }
  func.func @transform_3(%arg0: i32) -> (i32, i32) {
    %c0_i32 = arith.constant 0 : i32
    %c0_i32_0 = arith.constant 0 : i32
    return %c0_i32, %arg0 : i32, i32
  }
}

module attributes {stable_mosaic.version = 11 : i64} {
  func.func @_decode_kernel(%arg0: memref<2x8x768xf32, #tpu.memory_space<vmem>>, %arg1: memref<1x2x768xf32, #tpu.memory_space<vmem>>, %arg2: memref<1x2x768xf32, #tpu.memory_space<vmem>>, %arg3: memref<2x6x768xf32, #tpu.memory_space<vmem>>) attributes {dimension_semantics = [], scalar_prefetch = 0 : i64, scratch_operands = 0 : i64, tpu.core_type = #tpu.core_type<tc>} {
    %c0 = arith.constant 0 : index
    %c0_0 = arith.constant 0 : index
    %c0_1 = arith.constant 0 : index
    %0 = vector.load %arg0[%c0, %c0_0, %c0_1] : memref<2x8x768xf32, #tpu.memory_space<vmem>>, vector<2x8x768xf32>
    %1 = vector.extract_strided_slice %0 {offsets = [0, 0, 0], sizes = [2, 2, 768], strides = [1, 1, 1]} : vector<2x8x768xf32> to vector<2x2x768xf32>
    %2 = arith.negf %1 : vector<2x2x768xf32>
    %3 = math.exp %2 : vector<2x2x768xf32>
    %cst = arith.constant 1.000000e+00 : f32
    %4 = vector.broadcast %cst : f32 to vector<2x2x768xf32>
    %5 = arith.addf %4, %3 : vector<2x2x768xf32>
    %6 = arith.divf %4, %5 : vector<2x2x768xf32>
    %c0_2 = arith.constant 0 : index
    %c0_3 = arith.constant 0 : index
    %c0_4 = arith.constant 0 : index
    %7 = vector.load %arg1[%c0_2, %c0_3, %c0_4] : memref<1x2x768xf32, #tpu.memory_space<vmem>>, vector<1x2x768xf32>
    %8 = vector.broadcast %7 : vector<1x2x768xf32> to vector<2x2x768xf32>
    %9 = arith.addf %6, %8 : vector<2x2x768xf32>
    %cst_5 = arith.constant 1.000000e+00 : f32
    %10 = vector.broadcast %cst_5 : f32 to vector<2x2x768xf32>
    %11 = arith.mulf %9, %10 : vector<2x2x768xf32>
    %12 = vector.extract_strided_slice %0 {offsets = [0, 2, 0], sizes = [2, 2, 768], strides = [1, 1, 1]} : vector<2x8x768xf32> to vector<2x2x768xf32>
    %13 = math.exp %12 : vector<2x2x768xf32>
    %c0_6 = arith.constant 0 : index
    %c0_7 = arith.constant 0 : index
    %c0_8 = arith.constant 0 : index
    %14 = vector.load %arg2[%c0_6, %c0_7, %c0_8] : memref<1x2x768xf32, #tpu.memory_space<vmem>>, vector<1x2x768xf32>
    %15 = vector.broadcast %14 : vector<1x2x768xf32> to vector<2x2x768xf32>
    %16 = arith.mulf %13, %15 : vector<2x2x768xf32>
    %17 = vector.extract_strided_slice %0 {offsets = [0, 4, 0], sizes = [2, 1, 768], strides = [1, 1, 1]} : vector<2x8x768xf32> to vector<2x1x768xf32>
    %18 = arith.negf %17 : vector<2x1x768xf32>
    %19 = math.exp %18 : vector<2x1x768xf32>
    %cst_9 = arith.constant 1.000000e+00 : f32
    %20 = vector.broadcast %cst_9 : f32 to vector<2x1x768xf32>
    %21 = arith.addf %20, %19 : vector<2x1x768xf32>
    %22 = arith.divf %20, %21 : vector<2x1x768xf32>
    %23 = vector.extract_strided_slice %0 {offsets = [0, 5, 0], sizes = [2, 1, 768], strides = [1, 1, 1]} : vector<2x8x768xf32> to vector<2x1x768xf32>
    %cst_10 = arith.constant 0.000000e+00 : f32
    %24 = vector.broadcast %cst_10 : f32 to vector<2x1x768xf32>
    %25 = vector.extract_strided_slice %0 {offsets = [0, 6, 0], sizes = [2, 1, 768], strides = [1, 1, 1]} : vector<2x8x768xf32> to vector<2x1x768xf32>
    %26 = arith.cmpf ogt, %25, %23 : vector<2x1x768xf32>
    %27 = arith.select %26, %25, %23 : vector<2x1x768xi1>, vector<2x1x768xf32>
    %cst_11 = arith.constant 1.000000e+00 : f32
    %28 = vector.broadcast %cst_11 : f32 to vector<2x1x768xf32>
    %29 = arith.select %26, %28, %24 : vector<2x1x768xi1>, vector<2x1x768xf32>
    %30 = vector.extract_strided_slice %0 {offsets = [0, 7, 0], sizes = [2, 1, 768], strides = [1, 1, 1]} : vector<2x8x768xf32> to vector<2x1x768xf32>
    %31 = arith.cmpf ogt, %30, %27 : vector<2x1x768xf32>
    %cst_12 = arith.constant 2.000000e+00 : f32
    %32 = vector.broadcast %cst_12 : f32 to vector<2x1x768xf32>
    %33 = arith.select %31, %32, %29 : vector<2x1x768xi1>, vector<2x1x768xf32>
    %34 = tpu.concatenate %11, %16, %22, %33 in 1 : vector<2x2x768xf32>, vector<2x2x768xf32>, vector<2x1x768xf32>, vector<2x1x768xf32> -> vector<2x6x768xf32>
    %c0_13 = arith.constant 0 : index
    %c0_14 = arith.constant 0 : index
    %c0_15 = arith.constant 0 : index
    %35 = vector.load %arg3[%c0_13, %c0_14, %c0_15] : memref<2x6x768xf32, #tpu.memory_space<vmem>>, vector<2x6x768xf32>
    tpu.vector_store %arg3[%c0_13, %c0_14, %c0_15], %34 {strides = array<i32>} : memref<2x6x768xf32, #tpu.memory_space<vmem>>, vector<2x6x768xf32>,
    return
  }
}

module attributes {stable_mosaic.version = 11 : i64} {
  func.func @_conv_kernel(%arg0: i32, %arg1: memref<24x16xf32, #tpu.memory_space<vmem>>, %arg2: memref<16x128xf32, #tpu.memory_space<vmem>>, %arg3: memref<24x1xf32, #tpu.memory_space<vmem>>, %arg4: memref<24x128xf32, #tpu.memory_space<vmem>>) attributes {dimension_semantics = [#tpu.dimension_semantics<parallel>], iteration_bounds = array<i64: 1>, scalar_prefetch = 0 : i64, scratch_operands = 0 : i64, tpu.core_type = #tpu.core_type<tc>, window_params = [{pipeline_mode = #tpu.pipeline_mode<synchronous>, transform_indices = @transform_0, window_bounds = array<i64: 24, 16>}, {transform_indices = @transform_1, window_bounds = array<i64: 16, 128>}, {pipeline_mode = #tpu.pipeline_mode<synchronous>, transform_indices = @transform_2, window_bounds = array<i64: 24, 1>}, {transform_indices = @transform_3, window_bounds = array<i64: 24, 128>}]} {
    %c0 = arith.constant 0 : index
    %c0_0 = arith.constant 0 : index
    %0 = vector.load %arg1[%c0, %c0_0] : memref<24x16xf32, #tpu.memory_space<vmem>>, vector<24x16xf32>
    %c0_1 = arith.constant 0 : index
    %c0_2 = arith.constant 0 : index
    %1 = vector.load %arg2[%c0_1, %c0_2] : memref<16x128xf32, #tpu.memory_space<vmem>>, vector<16x128xf32>
    %cst = arith.constant dense<0.000000e+00> : vector<24x128xf32>
    %2 = tpu.matmul %0, %1, %cst {dimension_numbers = #tpu.dot_dimension_numbers<[1], [0], [0], [1], [0, 0, 1, 1], [], []>} : vector<24x16xf32>, vector<16x128xf32>, vector<24x128xf32> -> vector<24x128xf32>
    %c0_3 = arith.constant 0 : index
    %c0_4 = arith.constant 0 : index
    %3 = vector.load %arg3[%c0_3, %c0_4] : memref<24x1xf32, #tpu.memory_space<vmem>>, vector<24x1xf32>
    %4 = vector.broadcast %3 : vector<24x1xf32> to vector<24x128xf32>
    %5 = arith.addf %2, %4 : vector<24x128xf32>
    %c0_5 = arith.constant 0 : index
    %c0_6 = arith.constant 0 : index
    %6 = vector.load %arg4[%c0_5, %c0_6] : memref<24x128xf32, #tpu.memory_space<vmem>>, vector<24x128xf32>
    tpu.vector_store %arg4[%c0_5, %c0_6], %5 {strides = array<i32>} : memref<24x128xf32, #tpu.memory_space<vmem>>, vector<24x128xf32>,
    return
  }
  func.func @transform_0(%arg0: i32) -> (i32, i32) {
    %c0_i32 = arith.constant 0 : i32
    %c0_i32_0 = arith.constant 0 : i32
    %c0_i32_1 = arith.constant 0 : i32
    return %c0_i32, %c0_i32_0 : i32, i32
  }
  func.func @transform_1(%arg0: i32) -> (i32, i32) {
    %c0_i32 = arith.constant 0 : i32
    %c0_i32_0 = arith.constant 0 : i32
    return %c0_i32, %arg0 : i32, i32
  }
  func.func @transform_2(%arg0: i32) -> (i32, i32) {
    %c0_i32 = arith.constant 0 : i32
    %c0_i32_0 = arith.constant 0 : i32
    %c0_i32_1 = arith.constant 0 : i32
    return %c0_i32, %c0_i32_0 : i32, i32
  }
  func.func @transform_3(%arg0: i32) -> (i32, i32) {
    %c0_i32 = arith.constant 0 : i32
    %c0_i32_0 = arith.constant 0 : i32
    return %c0_i32, %arg0 : i32, i32
  }
}

module attributes {stable_mosaic.version = 11 : i64} {
  func.func @_decode_kernel(%arg0: memref<2x8x192xf32, #tpu.memory_space<vmem>>, %arg1: memref<1x2x192xf32, #tpu.memory_space<vmem>>, %arg2: memref<1x2x192xf32, #tpu.memory_space<vmem>>, %arg3: memref<2x6x192xf32, #tpu.memory_space<vmem>>) attributes {dimension_semantics = [], scalar_prefetch = 0 : i64, scratch_operands = 0 : i64, tpu.core_type = #tpu.core_type<tc>} {
    %c0 = arith.constant 0 : index
    %c0_0 = arith.constant 0 : index
    %c0_1 = arith.constant 0 : index
    %0 = vector.load %arg0[%c0, %c0_0, %c0_1] : memref<2x8x192xf32, #tpu.memory_space<vmem>>, vector<2x8x192xf32>
    %1 = vector.extract_strided_slice %0 {offsets = [0, 0, 0], sizes = [2, 2, 192], strides = [1, 1, 1]} : vector<2x8x192xf32> to vector<2x2x192xf32>
    %2 = arith.negf %1 : vector<2x2x192xf32>
    %3 = math.exp %2 : vector<2x2x192xf32>
    %cst = arith.constant 1.000000e+00 : f32
    %4 = vector.broadcast %cst : f32 to vector<2x2x192xf32>
    %5 = arith.addf %4, %3 : vector<2x2x192xf32>
    %6 = arith.divf %4, %5 : vector<2x2x192xf32>
    %c0_2 = arith.constant 0 : index
    %c0_3 = arith.constant 0 : index
    %c0_4 = arith.constant 0 : index
    %7 = vector.load %arg1[%c0_2, %c0_3, %c0_4] : memref<1x2x192xf32, #tpu.memory_space<vmem>>, vector<1x2x192xf32>
    %8 = vector.broadcast %7 : vector<1x2x192xf32> to vector<2x2x192xf32>
    %9 = arith.addf %6, %8 : vector<2x2x192xf32>
    %cst_5 = arith.constant 2.000000e+00 : f32
    %10 = vector.broadcast %cst_5 : f32 to vector<2x2x192xf32>
    %11 = arith.mulf %9, %10 : vector<2x2x192xf32>
    %12 = vector.extract_strided_slice %0 {offsets = [0, 2, 0], sizes = [2, 2, 192], strides = [1, 1, 1]} : vector<2x8x192xf32> to vector<2x2x192xf32>
    %13 = math.exp %12 : vector<2x2x192xf32>
    %c0_6 = arith.constant 0 : index
    %c0_7 = arith.constant 0 : index
    %c0_8 = arith.constant 0 : index
    %14 = vector.load %arg2[%c0_6, %c0_7, %c0_8] : memref<1x2x192xf32, #tpu.memory_space<vmem>>, vector<1x2x192xf32>
    %15 = vector.broadcast %14 : vector<1x2x192xf32> to vector<2x2x192xf32>
    %16 = arith.mulf %13, %15 : vector<2x2x192xf32>
    %17 = vector.extract_strided_slice %0 {offsets = [0, 4, 0], sizes = [2, 1, 192], strides = [1, 1, 1]} : vector<2x8x192xf32> to vector<2x1x192xf32>
    %18 = arith.negf %17 : vector<2x1x192xf32>
    %19 = math.exp %18 : vector<2x1x192xf32>
    %cst_9 = arith.constant 1.000000e+00 : f32
    %20 = vector.broadcast %cst_9 : f32 to vector<2x1x192xf32>
    %21 = arith.addf %20, %19 : vector<2x1x192xf32>
    %22 = arith.divf %20, %21 : vector<2x1x192xf32>
    %23 = vector.extract_strided_slice %0 {offsets = [0, 5, 0], sizes = [2, 1, 192], strides = [1, 1, 1]} : vector<2x8x192xf32> to vector<2x1x192xf32>
    %cst_10 = arith.constant 0.000000e+00 : f32
    %24 = vector.broadcast %cst_10 : f32 to vector<2x1x192xf32>
    %25 = vector.extract_strided_slice %0 {offsets = [0, 6, 0], sizes = [2, 1, 192], strides = [1, 1, 1]} : vector<2x8x192xf32> to vector<2x1x192xf32>
    %26 = arith.cmpf ogt, %25, %23 : vector<2x1x192xf32>
    %27 = arith.select %26, %25, %23 : vector<2x1x192xi1>, vector<2x1x192xf32>
    %cst_11 = arith.constant 1.000000e+00 : f32
    %28 = vector.broadcast %cst_11 : f32 to vector<2x1x192xf32>
    %29 = arith.select %26, %28, %24 : vector<2x1x192xi1>, vector<2x1x192xf32>
    %30 = vector.extract_strided_slice %0 {offsets = [0, 7, 0], sizes = [2, 1, 192], strides = [1, 1, 1]} : vector<2x8x192xf32> to vector<2x1x192xf32>
    %31 = arith.cmpf ogt, %30, %27 : vector<2x1x192xf32>
    %cst_12 = arith.constant 2.000000e+00 : f32
    %32 = vector.broadcast %cst_12 : f32 to vector<2x1x192xf32>
    %33 = arith.select %31, %32, %29 : vector<2x1x192xi1>, vector<2x1x192xf32>
    %34 = tpu.concatenate %11, %16, %22, %33 in 1 : vector<2x2x192xf32>, vector<2x2x192xf32>, vector<2x1x192xf32>, vector<2x1x192xf32> -> vector<2x6x192xf32>
    %c0_13 = arith.constant 0 : index
    %c0_14 = arith.constant 0 : index
    %c0_15 = arith.constant 0 : index
    %35 = vector.load %arg3[%c0_13, %c0_14, %c0_15] : memref<2x6x192xf32, #tpu.memory_space<vmem>>, vector<2x6x192xf32>
    tpu.vector_store %arg3[%c0_13, %c0_14, %c0_15], %34 {strides = array<i32>} : memref<2x6x192xf32, #tpu.memory_space<vmem>>, vector<2x6x192xf32>,
    return
  }
}

</mosaic_0001>

<bundles_post_ra>
// kernel: yolo_forward.10
= control target key start
LH: loop header
LB: loop body
LE: loop exit
PB: predicated region body
PF: predicated region fallthrough
CT: control target
= control target key end

     0   :  { %s482_s12 = smov 0   ;;  %s484_s13 = smov 0   ;;  %s542_s0 = inlined_call_operand.vmem [shape: f32[8,27], index: 0, kind: input, shape index: {}]   ;;  %s543_s1 = inlined_call_operand.vmem [shape: f32[27,512], index: 1, kind: input, shape index: {}]   ;;  %s544_s2 = inlined_call_operand.vmem [shape: f32[8,1], index: 2, kind: input, shape index: {}]   ;;  %s545_s3 = inlined_call_operand.vmem [shape: f32[8,512], index: 3, kind: output, shape index: {}]  }
   0x1   :  { %s486_s14 = smov 0  }
   0x2 LB: > { %s367_s15 = sadd.s32 4294967295, %s455_s14   ;;  %s499_s16 = sadd.s32 1, %s455_s14   ;;  %s455_s14 = sphi %s486_s14, %s548_s14   ;;  %s451_s13 = sphi %s484_s13, %s547_s13   ;;  %s447_s12 = sphi %s482_s12, %s546_s12  }
   0x3   : > { %s38_s17 = ssub.s32 %s455_s14, %s499_s16  ;;  %s41_s18 = sadd.s32 1, %s451_s13 }
   0x4   : > { %p39_p0 = scmp.eq.s32.totalorder %s38_s17, 0  ;;  %p48_p1 = scmp.ne.s32.totalorder %s451_s13, %s447_s12 }
   0x5   : > { %p49_p2 = scmp.eq.s32.totalorder %s455_s14, 0  ;;  %p370_p4 = scmp.ge.s32.totalorder %s455_s14, 4 }
   0x6   : > { %s508_s19 = scalar_select %p39_p0, %s451_s13, %s41_s18  }
   0x7   : > { %p50_p3 = por %p49_p2, %p48_p1  ;;  %127 = sbr.rel (%p370_p4) target bundleno = 22 (0x16), region = 24 }
   0xe   : > { %130 = sbr.rel (!%p50_p3) target bundleno = 22 (0x16), region = 28  ;;  %s132_s20 = sand.u32 (%p50_p3), 1, %s451_s13  }
   0xf   : > { %s372_s21 = sshll.u32 (%p50_p3), %s455_s14, 3  ;;  %s371_s22 = sshll.u32 (%p50_p3), %s132_s20, 5 }
  0x10   : > { %s136_s25 = scalar_lea.vmem (%p50_p3), %s543_s1, %s372_s21  ;;  %s134_s26 = scalar_lea.vmem (%p50_p3), [#allocation2], %s371_s22 }
  0x11   : > { %v170_v0 = vld [vmem:[%s136_s25] sm:$0xff] (%p50_p3) }
  0x12   : > { %v172_v1 = vld [vmem:[%s136_s25 + $0x20] sm:$0xff] (%p50_p3)  ;;  %171 = vst [vmem:[%s134_s26] sm:$0xff] (%p50_p3), %v170_v0 }
  0x13   : > { %v174_v2 = vld [vmem:[%s136_s25 + $0x40] sm:$0xff] (%p50_p3)  ;;  %173 = vst [vmem:[%s134_s26 + $0x8] sm:$0xff] (%p50_p3), %v172_v1 }
  0x14   : > { %175 = vst [vmem:[%s134_s26 + $0x10] sm:$0xff] (%p50_p3), %v174_v2  ;;  %v176_v3 = vld [vmem:[%s136_s25 + $0x60] sm:$0xff] (%p50_p3) }
  0x15   : > { %177 = vst [vmem:[%s134_s26 + $0x18] sm:$0xff] %v176_v3 }
  0x16 PF: > { %p373_p5 = scmp.ge.s32.totalorder %s455_s14, 1  ;;  %p182_p6 = scmp.lt.s32.totalorder %s455_s14, 5 }
  0x18   : > { %p183_p7 = pnand %p373_p5, %p182_p6 }
  0x19   : > { %s189_s27 = sand.u32 (!%p183_p7), 1, %s447_s12   ;;  %v457_v4 = vmov (!%p183_p7), 0.0|0.0   ;;  %v220_v5 = vld [vmem:[%s544_s2] sm:$0xff] (!%p183_p7)  ;;  %vm458_vm0 = vmmov (!%p183_p7), 0   ;;  %v459_v6 = vmov (!%p183_p7), 0.0   ;;  %v460_v7 = vmov (!%p183_p7), 0  }
  0x1a   : > { %186 = sbr.rel (%p183_p7) target bundleno = 256 (0x100), region = 66  ;;  %396 = vmatprep.subr.bf16.mxu0 (!%p183_p7), %v457_v4  ;;  %s374_s28 = sshll.u32 (!%p183_p7), %s189_s27, 5  ;;  %393 = vmatprep.mubr.msk.f32.mxu0 (!%p183_p7), %vm458_vm0, %v459_v6  ;;  %vm230_vm1 = vcmask (!%p183_p7), 1042432   ;;  %vm461_vm2 = vmmov (!%p183_p7), 1   ;;  %v215_v14 = vld [vmem:[%s542_s0] sm:$0xff] (!%p183_p7)  ;;  %vm226_vm4 = vcmask (!%p183_p7), 220160  }
  0x1b   : > { %432 = vset.pattern.permute.xlu0 (!%p183_p7), %v460_v7  ;;  %s191_s4 = scalar_lea.vmem (!%p183_p7), [#allocation2], %s374_s28  ;;  %vm401_vm3 = vmpackc.low (!%p183_p7), %vm230_vm1, %vm461_vm2  ;;  %p211_p8 = scmp.lt.s32.totalorder (!%p183_p7), %s367_s15, 3 }
  0x1c   : > { %v216_v8 = vld [vmem:[%s191_s4] sm:$0xff] (!%p183_p7)  ;;  %v217_v9 = vld [vmem:[%s191_s4 + $0x8] sm:$0xff] (!%p183_p7)  ;;  %v218_v10 = vld [vmem:[%s191_s4 + $0x10] sm:$0xff] (!%p183_p7)  ;;  %223 = vperm.xlu0 (!%p183_p7), %432, %v220_v5  }
  0x1d   : > { %v397_v11 = vpack.c.bf16 (!%p183_p7), %v217_v9, %v216_v8  ;;  %v219_v12 = vld [vmem:[%s191_s4 + $0x18] sm:$0x7] (!%p183_p7) }
  0x1e   : > { %v400_v13 = vpack.c.bf16 (!%p183_p7), %v219_v12, %v218_v10 }
  0x1f   : > { %398 = vmatpush3.bf16.msra.mxu0 (!%p183_p7), %v397_v11 }
  0x20   : > { %399 = vmatprep.subr.bf16.mxu0 (!%p183_p7), %v457_v4 }
  0x21   : > { %s550_s15 = smov (!%p211_p8, %s367_s15), 3 }
  0x22   : > { %s375_s7 = sshll.u32 %s550_s15, 3 }
  0x23   : > { %402 = vmatpush3.bf16.msk.msra.mxu0 %vm401_vm3, %v400_v13  ;;  %s214_s10 = scalar_lea.vmem %s545_s3, %s375_s7 }
  0x26   : > { %394 = vmatmul.mubr.msk.f32.vlgmr.msra.gmra.mrb[0].mxu0 %vm226_vm4, %v215_v14 }
  0x9b   : > { %v224_v15 = vpop.permute.xlu0 %223 }
  0xf9   : > { %v300_v16 = vpop.f32.mrb[0].mxu0 }
  0xfa   : > { %v301_v17 = vadd.f32 %v300_v16, %v224_v15  ;;  %v395_v18 = vpop.f32.mrb[1].mxu0 }
  0xfc   : > { %vm304_vm5 = vcmp.gt.f32.partialorder %v301_v17, 0.0  ;;  %v305_v19 = vmul.f32 0.1, %v301_v17 }
  0xfe   : > { %v306_v20 = vsel %vm304_vm5, %v301_v17, %v305_v19 }
  0xff   : > { %307 = vst [vmem:[%s214_s10] sm:$0xff] %v306_v20 }
 0x100 PF: > { %p10_p9 = scmp.ge.s32.totalorder %s499_s16, 6   ;;  %s546_s12 = smov %s451_s13 }
 0x101   : > { %s547_s13 = smov %s508_s19  ;;  %s548_s14 = smov %s499_s16 }
 0x102   :  { %12 = sbr.rel (!%p10_p9) target bundleno = 2 (0x2), region = 105 }

// kernel: yolo_forward.11
= control target key start
LH: loop header
LB: loop body
LE: loop exit
PB: predicated region body
PF: predicated region fallthrough
CT: control target
= control target key end

     0   :  { %s520_s12 = smov 0   ;;  %s522_s13 = smov 0   ;;  %s580_s0 = inlined_call_operand.vmem [shape: f32[8,72], index: 0, kind: input, shape index: {}]   ;;  %s581_s1 = inlined_call_operand.vmem [shape: f32[72,512], index: 1, kind: input, shape index: {}]   ;;  %s582_s2 = inlined_call_operand.vmem [shape: f32[8,1], index: 2, kind: input, shape index: {}]   ;;  %s583_s3 = inlined_call_operand.vmem [shape: f32[8,512], index: 3, kind: output, shape index: {}]  }
   0x1   :  { %s524_s14 = smov 0  }
   0x2 LB: > { %s388_s15 = sadd.s32 4294967295, %s494_s14   ;;  %s537_s16 = sadd.s32 1, %s494_s14   ;;  %s494_s14 = sphi %s524_s14, %s586_s14   ;;  %s490_s13 = sphi %s522_s13, %s585_s13   ;;  %s486_s12 = sphi %s520_s12, %s584_s12  }
   0x3   : > { %s38_s17 = ssub.s32 %s494_s14, %s537_s16  ;;  %s41_s18 = sadd.s32 1, %s490_s13 }
   0x4   : > { %p39_p0 = scmp.eq.s32.totalorder %s38_s17, 0  ;;  %p48_p1 = scmp.ne.s32.totalorder %s490_s13, %s486_s12 }
   0x5   : > { %p49_p2 = scmp.eq.s32.totalorder %s494_s14, 0  ;;  %p391_p4 = scmp.ge.s32.totalorder %s494_s14, 4 }
   0x6   : > { %s546_s19 = scalar_select %p39_p0, %s490_s13, %s41_s18  }
   0x7   : > { %p50_p3 = por %p49_p2, %p48_p1  ;;  %127 = sbr.rel (%p391_p4) target bundleno = 27 (0x1b), region = 24 }
   0xe   : > { %130 = sbr.rel (!%p50_p3) target bundleno = 27 (0x1b), region = 28  ;;  %s132_s20 = sand.u32 (%p50_p3), 1, %s490_s13  }
   0xf   : > { %s392_s21 = sshll.u32 (%p50_p3), %s494_s14, 3  ;;  %s441_s22 = smul.u32 (%p50_p3), 72, %s132_s20 }
  0x10   : > { %s136_s25 = scalar_lea.vmem (%p50_p3), %s581_s1, %s392_s21 }
  0x11   : > { %v180_v0 = vld [vmem:[%s136_s25] sm:$0xff] (%p50_p3)  ;;  %s134_s26 = scalar_lea.vmem (%p50_p3), [#allocation2], %s441_s22 }
  0x12   : > { %v182_v1 = vld [vmem:[%s136_s25 + $0x20] sm:$0xff] (%p50_p3)  ;;  %181 = vst [vmem:[%s134_s26] sm:$0xff] (%p50_p3), %v180_v0 }
  0x13   : > { %v184_v2 = vld [vmem:[%s136_s25 + $0x40] sm:$0xff] (%p50_p3)  ;;  %183 = vst [vmem:[%s134_s26 + $0x8] sm:$0xff] (%p50_p3), %v182_v1 }
  0x14   : > { %v186_v3 = vld [vmem:[%s136_s25 + $0x60] sm:$0xff] (%p50_p3)  ;;  %185 = vst [vmem:[%s134_s26 + $0x10] sm:$0xff] (%p50_p3), %v184_v2 }
  0x15   : > { %v188_v4 = vld [vmem:[%s136_s25 + $0x80] sm:$0xff]  ;;  %187 = vst [vmem:[%s134_s26 + $0x18] sm:$0xff] %v186_v3 }
  0x16   : > { %v190_v5 = vld [vmem:[%s136_s25 + $0xa0] sm:$0xff]  ;;  %189 = vst [vmem:[%s134_s26 + $0x20] sm:$0xff] %v188_v4 }
  0x17   : > { %191 = vst [vmem:[%s134_s26 + $0x28] sm:$0xff] %v190_v5  ;;  %v192_v6 = vld [vmem:[%s136_s25 + $0xc0] sm:$0xff] }
  0x18   : > { %v194_v7 = vld [vmem:[%s136_s25 + $0xe0] sm:$0xff]  ;;  %193 = vst [vmem:[%s134_s26 + $0x30] sm:$0xff] %v192_v6 }
  0x19   : > { %v196_v8 = vld [vmem:[%s136_s25 + $0x100] sm:$0xff]  ;;  %195 = vst [vmem:[%s134_s26 + $0x38] sm:$0xff] %v194_v7 }
  0x1a   : > { %197 = vst [vmem:[%s134_s26 + $0x40] sm:$0xff] %v196_v8 }
  0x1b PF: > { %p393_p5 = scmp.ge.s32.totalorder %s494_s14, 1  ;;  %p202_p6 = scmp.lt.s32.totalorder %s494_s14, 5 }
  0x1d   : > { %p203_p7 = pnand %p393_p5, %p202_p6 }
  0x1e   : > { %s209_s27 = sand.u32 (!%p203_p7), 1, %s486_s12   ;;  %v496_v9 = vmov (!%p203_p7), 0.0|0.0   ;;  %vm497_vm0 = vmmov (!%p203_p7), 0   ;;  %v498_v10 = vmov (!%p203_p7), 0.0   ;;  %v245_v11 = vld [vmem:[%s582_s2] sm:$0xff] (!%p203_p7)  ;;  %v499_v12 = vmov (!%p203_p7), 0  }
  0x1f   : > { %206 = sbr.rel (%p203_p7) target bundleno = 273 (0x111), region = 66  ;;  %429 = vmatprep.subr.bf16.mxu0 (!%p203_p7), %v496_v9  ;;  %426 = vmatprep.mubr.msk.f32.mxu0 (!%p203_p7), %vm497_vm0, %v498_v10  ;;  %v235_v26 = vld [vmem:[%s580_s0] sm:$0xff] (!%p203_p7)  ;;  %vm251_vm1 = vcmask (!%p203_p7), 588800   ;;  %p231_p8 = scmp.lt.s32.totalorder (!%p203_p7), %s388_s15, 3 }
  0x20   : > { %s442_s28 = smul.u32 (!%p203_p7), 72, %s209_s27  ;;  %471 = vset.pattern.permute.xlu0 (!%p203_p7), %v499_v12 }
  0x21   : > { %248 = vperm.xlu0 (!%p203_p7), %471, %v245_v11  }
  0x22   : > { %s211_s4 = scalar_lea.vmem (!%p203_p7), [#allocation2], %s442_s28 }
  0x23   : > { %v236_v13 = vld [vmem:[%s211_s4] sm:$0xff] (!%p203_p7)  ;;  %v237_v14 = vld [vmem:[%s211_s4 + $0x8] sm:$0xff] (!%p203_p7)  ;;  %v238_v15 = vld [vmem:[%s211_s4 + $0x10] sm:$0xff] (!%p203_p7) }
  0x24   : > { %v430_v16 = vpack.c.bf16 (!%p203_p7), %v237_v14, %v236_v13  ;;  %v239_v17 = vld [vmem:[%s211_s4 + $0x18] sm:$0xff] (!%p203_p7)  ;;  %v240_v19 = vld [vmem:[%s211_s4 + $0x20] sm:$0xff] (!%p203_p7)  ;;  %v241_v20 = vld [vmem:[%s211_s4 + $0x28] sm:$0xff] (!%p203_p7) }
  0x25   : > { %v433_v18 = vpack.c.bf16 (!%p203_p7), %v239_v17, %v238_v15  ;;  %v436_v21 = vpack.c.bf16 (!%p203_p7), %v241_v20, %v240_v19  ;;  %v242_v22 = vld [vmem:[%s211_s4 + $0x30] sm:$0xff] (!%p203_p7)  ;;  %v243_v23 = vld [vmem:[%s211_s4 + $0x38] sm:$0xff] (!%p203_p7)  ;;  %v244_v25 = vld [vmem:[%s211_s4 + $0x40] sm:$0xff] (!%p203_p7) }
  0x26   : > { %431 = vmatpush3.bf16.msra.mxu0 %v430_v16  ;;  %v439_v24 = vpack.c.bf16 %v243_v23, %v242_v22  ;;  %s588_s15 = smov (!%p231_p8, %s388_s15), 3 }
  0x27   : > { %432 = vmatprep.subr.bf16.mxu0 %v496_v9  ;;  %s394_s7 = sshll.u32 %s588_s15, 3 }
  0x28   : > { %s234_s10 = scalar_lea.vmem %s583_s3, %s394_s7 }
  0x2a   : > { %434 = vmatpush3.bf16.msra.mxu0 %v433_v18 }
  0x2b   : > { %435 = vmatprep.subr.bf16.mxu0 %v496_v9 }
  0x2e   : > { %437 = vmatpush3.bf16.msra.mxu0 %v436_v21 }
  0x2f   : > { %438 = vmatprep.subr.bf16.mxu0 %v496_v9 }
  0x32   : > { %440 = vmatpush3.bf16.msra.mxu0 %v439_v24 }
  0x33   : > { %424 = vmatprep.subr.mxu0 %v498_v10 }
  0x36   : > { %425 = vmatpush3.msra.mxu0 %v244_v25 }
  0x37   : > { %427 = vmatmul.mubr.msk.f32.vlgmr.msra.gmra.mrb[0].mxu0 %vm251_vm1, %v235_v26 }
  0xa0   : > { %v249_v27 = vpop.permute.xlu0 %248 }
 0x10a   : > { %v321_v28 = vpop.f32.mrb[0].mxu0 }
 0x10b   : > { %v322_v29 = vadd.f32 %v321_v28, %v249_v27  ;;  %v428_v30 = vpop.f32.mrb[1].mxu0 }
 0x10d   : > { %vm325_vm2 = vcmp.gt.f32.partialorder %v322_v29, 0.0  ;;  %v326_v31 = vmul.f32 0.1, %v322_v29 }
 0x10f   : > { %v327_v32 = vsel %vm325_vm2, %v322_v29, %v326_v31 }
 0x110   : > { %328 = vst [vmem:[%s234_s10] sm:$0xff] %v327_v32 }
 0x111 PF: > { %p10_p9 = scmp.ge.s32.totalorder %s537_s16, 6   ;;  %s584_s12 = smov %s490_s13 }
 0x112   : > { %s585_s13 = smov %s546_s19  ;;  %s586_s14 = smov %s537_s16 }
 0x113   :  { %12 = sbr.rel (!%p10_p9) target bundleno = 2 (0x2), region = 105 }

// kernel: yolo_forward.12
= control target key start
LH: loop header
LB: loop body
LE: loop exit
PB: predicated region body
PF: predicated region fallthrough
CT: control target
= control target key end

     0   :  { %v183_v3 = vmov 0   ;;  %vm37_vm0 = vcmask 588800   ;;  %s251_s1 = inlined_call_operand.vmem [shape: f32[72,128], index: 1, kind: input, shape index: {}]   ;;  %s252_s0 = inlined_call_operand.vmem [shape: f32[16,72], index: 0, kind: input, shape index: {}]   ;;  %s253_s2 = inlined_call_operand.vmem [shape: f32[16,1], index: 2, kind: input, shape index: {}]   ;;  %s254_s3 = inlined_call_operand.vmem [shape: f32[16,128], index: 3, kind: output, shape index: {}]  }
   0x1   :  { %v16_v0 = vld [vmem:[%s251_s1] sm:$0xff]  ;;  %v17_v1 = vld [vmem:[%s251_s1 + $0x8] sm:$0xff]  ;;  %v18_v2 = vld [vmem:[%s251_s1 + $0x10] sm:$0xff]  ;;  %182 = vset.pattern.permute.xlu0 %v183_v3 }
   0x2   :  { %v165_v4 = vpack.c.bf16 %v17_v1, %v16_v0  ;;  %v19_v5 = vld [vmem:[%s251_s1 + $0x18] sm:$0xff]  ;;  %v20_v7 = vld [vmem:[%s251_s1 + $0x20] sm:$0xff]  ;;  %v21_v8 = vld [vmem:[%s251_s1 + $0x28] sm:$0xff] }
   0x3   :  { %v169_v6 = vpack.c.bf16 %v19_v5, %v18_v2  ;;  %v14_v9 = vld [vmem:[%s252_s0] sm:$0xff]  ;;  %v173_v11 = vpack.c.bf16 %v21_v8, %v20_v7  ;;  %v22_v12 = vld [vmem:[%s251_s1 + $0x30] sm:$0xff]  ;;  %v23_v13 = vld [vmem:[%s251_s1 + $0x38] sm:$0xff] }
   0x4   :  { %166 = vmatprep.subr.bf16.mxu0 %v165_v4  ;;  %v25_v10 = vld [vmem:[%s253_s2] sm:$0xff]  ;;  %162 = vmatprep.mubr.msk.f32.mxu0 %vm37_vm0, %v14_v9  ;;  %v26_v14 = vld [vmem:[%s253_s2 + $0x8] sm:$0xff]  ;;  %v177_v15 = vpack.c.bf16 %v23_v13, %v22_v12 }
   0x5   :  { %168 = vmatpush3.bf16.msra.mxu0 %v165_v4  ;;  %29 = vperm.xlu0 %182, %v25_v10   ;;  %v24_v16 = vld [vmem:[%s251_s1 + $0x40] sm:$0xff]  ;;  %v15_v17 = vld [vmem:[%s252_s0 + $0x8] sm:$0xff] }
   0x6   :  { %170 = vmatprep.subr.bf16.mxu0 %v169_v6 }
   0x9   :  { %172 = vmatpush3.bf16.msra.mxu0 %v169_v6  ;;  %34 = vperm.xlu0 %182, %v26_v14  }
   0xa   :  { %174 = vmatprep.subr.bf16.mxu0 %v173_v11 }
   0xd   :  { %176 = vmatpush3.bf16.msra.mxu0 %v173_v11 }
   0xe   :  { %178 = vmatprep.subr.bf16.mxu0 %v177_v15 }
  0x11   :  { %180 = vmatpush3.bf16.msra.mxu0 %v177_v15 }
  0x12   :  { %160 = vmatprep.subr.mxu0 %v24_v16 }
  0x15   :  { %161 = vmatpush3.msra.mxu0 %v24_v16 }
  0x16   :  { %163 = vmatmul.mubr.msk.f32.vlgmr.msra.gmra.mrb[0].mxu0 %vm37_vm0, %v15_v17 }
  0x84   :  { %v30_v18 = vpop.permute.xlu0 %29 }
  0x88   :  { %v35_v19 = vpop.permute.xlu0 %34 }
  0xe9   :  { %v164_v20 = vpop.f32.mrb[0].mxu0 }
  0xea   :  { %v116_v21 = vadd.f32 %v164_v20, %v35_v19  ;;  %v110_v22 = vpop.f32.mrb[1].mxu0 }
  0xeb   :  { %v111_v23 = vadd.f32 %v110_v22, %v30_v18 }
  0xec   :  { %vm120_vm1 = vcmp.gt.f32.partialorder %v116_v21, 0.0  ;;  %v122_v24 = vmul.f32 0.1, %v116_v21 }
  0xed   :  { %vm119_vm2 = vcmp.gt.f32.partialorder %v111_v23, 0.0  ;;  %v121_v25 = vmul.f32 0.1, %v111_v23 }
  0xee   :  { %v124_v26 = vsel %vm120_vm1, %v116_v21, %v122_v24 }
  0xef   :  { %126 = vst [vmem:[%s254_s3 + $0x8] sm:$0xff] %v124_v26  ;;  %v123_v27 = vsel %vm119_vm2, %v111_v23, %v121_v25 }
  0xf0   :  { %125 = vst [vmem:[%s254_s3] sm:$0xff] %v123_v27 }

// kernel: yolo_forward.13
= control target key start
LH: loop header
LB: loop body
LE: loop exit
PB: predicated region body
PF: predicated region fallthrough
CT: control target
= control target key end

     0   :  { %vm30_vm0 = vcmask 130048   ;;  %v143_v3 = vmov 0   ;;  %s190_s1 = inlined_call_operand.vmem [shape: f32[16,128], index: 1, kind: input, shape index: {}]   ;;  %s191_s0 = inlined_call_operand.vmem [shape: f32[16,16], index: 0, kind: input, shape index: {}]   ;;  %s192_s2 = inlined_call_operand.vmem [shape: f32[16,1], index: 2, kind: input, shape index: {}]   ;;  %s193_s3 = inlined_call_operand.vmem [shape: f32[16,128], index: 3, kind: output, shape index: {}]  }
   0x1   :  { %v16_v0 = vld [vmem:[%s190_s1] sm:$0xff]  ;;  %v17_v1 = vld [vmem:[%s190_s1 + $0x8] sm:$0xff]  ;;  %142 = vset.pattern.permute.xlu0 %v143_v3 }
   0x2   :  { %v14_v2 = vld [vmem:[%s191_s0] sm:$0xff]  ;;  %v137_v4 = vpack.c.bf16 %v17_v1, %v16_v0  ;;  %v19_v6 = vld [vmem:[%s192_s2 + $0x8] sm:$0xff] }
   0x3   :  { %134 = vmatprep.mubr.msk.f32.mxu0 %vm30_vm0, %v14_v2  ;;  %v18_v5 = vld [vmem:[%s192_s2] sm:$0xff]  ;;  %v15_v7 = vld [vmem:[%s191_s0 + $0x8] sm:$0xff] }
   0x4   :  { %22 = vperm.xlu0 %142, %v18_v5   ;;  %138 = vmatprep.subr.bf16.mxu0 %v137_v4 }
   0x5   :  { %140 = vmatpush3.bf16.msra.mxu0 %v137_v4 }
   0x8   :  { %27 = vperm.xlu0 %142, %v19_v6   ;;  %135 = vmatmul.mubr.msk.f32.vlgmr.msra.gmra.mrb[0].mxu0 %vm30_vm0, %v15_v7 }
  0x83   :  { %v23_v8 = vpop.permute.xlu0 %22 }
  0x87   :  { %v28_v9 = vpop.permute.xlu0 %27 }
  0xdb   :  { %v136_v10 = vpop.f32.mrb[0].mxu0 }
  0xdc   :  { %v109_v11 = vadd.f32 %v136_v10, %v28_v9  ;;  %v103_v12 = vpop.f32.mrb[1].mxu0 }
  0xdd   :  { %v104_v13 = vadd.f32 %v103_v12, %v23_v8 }
  0xde   :  { %vm113_vm1 = vcmp.gt.f32.partialorder %v109_v11, 0.0  ;;  %v115_v14 = vmul.f32 0.1, %v109_v11 }
  0xdf   :  { %vm112_vm2 = vcmp.gt.f32.partialorder %v104_v13, 0.0  ;;  %v114_v15 = vmul.f32 0.1, %v104_v13 }
  0xe0   :  { %v117_v16 = vsel %vm113_vm1, %v109_v11, %v115_v14 }
  0xe1   :  { %119 = vst [vmem:[%s193_s3 + $0x8] sm:$0xff] %v117_v16  ;;  %v116_v17 = vsel %vm112_vm2, %v104_v13, %v114_v15 }
  0xe2   :  { %118 = vst [vmem:[%s193_s3] sm:$0xff] %v116_v17 }

// kernel: yolo_forward.14
= control target key start
LH: loop header
LB: loop body
LE: loop exit
PB: predicated region body
PF: predicated region fallthrough
CT: control target
= control target key end

     0   :  { %v199_v0 = vmov 0.0|0.0   ;;  %v200_v6 = vmov 0   ;;  %vm51_vm0 = vcmask 130048   ;;  %s328_s1 = inlined_call_operand.vmem [shape: f32[144,128], index: 1, kind: input, shape index: {}]   ;;  %s329_s0 = inlined_call_operand.vmem [shape: f32[16,144], index: 0, kind: input, shape index: {}]   ;;  %s330_s2 = inlined_call_operand.vmem [shape: f32[16,1], index: 2, kind: input, shape index: {}]   ;;  %s331_s3 = inlined_call_operand.vmem [shape: f32[16,128], index: 3, kind: input, shape index: {}]   ;;  %s332_s4 = inlined_call_operand.vmem [shape: f32[16,128], index: 4, kind: output, shape index: {}]  }
   0x1   :  { %151 = vmatprep.subr.bf16.mxu0 %v199_v0  ;;  %178 = vmatprep.subr.bf16.mxu1 %v199_v0  ;;  %v21_v1 = vld [vmem:[%s328_s1] sm:$0xff]  ;;  %v22_v2 = vld [vmem:[%s328_s1 + $0x8] sm:$0xff]  ;;  %v23_v3 = vld [vmem:[%s328_s1 + $0x10] sm:$0xff] }
   0x2   :  { %v152_v4 = vpack.c.bf16 %v22_v2, %v21_v1  ;;  %v24_v5 = vld [vmem:[%s328_s1 + $0x18] sm:$0xff]  ;;  %198 = vset.pattern.permute.xlu0 %v200_v6  ;;  %v25_v8 = vld [vmem:[%s328_s1 + $0x20] sm:$0xff]  ;;  %v26_v9 = vld [vmem:[%s328_s1 + $0x28] sm:$0xff] }
   0x3   :  { %v155_v7 = vpack.c.bf16 %v24_v5, %v23_v3  ;;  %v18_v10 = vld [vmem:[%s329_s0 + $0x8] sm:$0xff]  ;;  %v20_v11 = vld [vmem:[%s329_s0 + $0x18] sm:$0xff]  ;;  %v158_v12 = vpack.c.bf16 %v26_v9, %v25_v8  ;;  %v39_v13 = vld [vmem:[%s330_s2] sm:$0xff] }
   0x4   :  { %153 = vmatpush1.bf16.msra.mxu0 %v152_v4  ;;  %187 = vmatpush1.bf16.msra.mxu1 %v152_v4  ;;  %v27_v14 = vld [vmem:[%s328_s1 + $0x30] sm:$0xff]  ;;  %v28_v15 = vld [vmem:[%s328_s1 + $0x38] sm:$0xff]  ;;  %v40_v17 = vld [vmem:[%s330_s2 + $0x8] sm:$0xff] }
   0x5   :  { %154 = vmatprep.subr.bf16.mxu0 %v199_v0  ;;  %179 = vmatprep.subr.bf16.mxu1 %v199_v0  ;;  %v161_v16 = vpack.c.bf16 %v28_v15, %v27_v14  ;;  %v29_v18 = vld [vmem:[%s328_s1 + $0x40] sm:$0xff]  ;;  %v30_v19 = vld [vmem:[%s328_s1 + $0x48] sm:$0xff]  ;;  %v31_v21 = vld [vmem:[%s328_s1 + $0x50] sm:$0xff] }
   0x6   :  { %149 = vmatprep.mubr.msk.f32.mxu0 %vm51_vm0, %v18_v10  ;;  %150 = vmatprep.mubr.msk.f32.mxu1 %vm51_vm0, %v20_v11  ;;  %v164_v20 = vpack.c.bf16 %v30_v19, %v29_v18  ;;  %v32_v22 = vld [vmem:[%s328_s1 + $0x58] sm:$0xff]  ;;  %v33_v24 = vld [vmem:[%s328_s1 + $0x60] sm:$0xff]  ;;  %v34_v25 = vld [vmem:[%s328_s1 + $0x68] sm:$0xff] }
   0x7   :  { %43 = vperm.xlu0 %198, %v39_v13   ;;  %v167_v23 = vpack.c.bf16 %v32_v22, %v31_v21  ;;  %v170_v26 = vpack.c.bf16 %v34_v25, %v33_v24  ;;  %v35_v27 = vld [vmem:[%s328_s1 + $0x70] sm:$0xff]  ;;  %v36_v28 = vld [vmem:[%s328_s1 + $0x78] sm:$0xff]  ;;  %v37_v30 = vld [vmem:[%s328_s1 + $0x80] sm:$0xff] }
   0x8   :  { %156 = vmatpush1.bf16.msra.mxu0 %v155_v7  ;;  %188 = vmatpush1.bf16.msra.mxu1 %v155_v7  ;;  %v173_v29 = vpack.c.bf16 %v36_v28, %v35_v27  ;;  %v38_v31 = vld [vmem:[%s328_s1 + $0x88] sm:$0xff]  ;;  %v17_v33 = vld [vmem:[%s329_s0] sm:$0xff]  ;;  %v19_v34 = vld [vmem:[%s329_s0 + $0x10] sm:$0xff] }
   0x9   :  { %157 = vmatprep.subr.bf16.mxu0 %v199_v0  ;;  %180 = vmatprep.subr.bf16.mxu1 %v199_v0  ;;  %v176_v32 = vpack.c.bf16 %v38_v31, %v37_v30  ;;  %v139_v43 = vld [vmem:[%s331_s3] sm:$0xff]  ;;  %v140_v44 = vld [vmem:[%s331_s3 + $0x8] sm:$0xff] }
   0xb   :  { %48 = vperm.xlu0 %198, %v40_v17  }
   0xc   :  { %159 = vmatpush1.bf16.msra.mxu0 %v158_v12  ;;  %189 = vmatpush1.bf16.msra.mxu1 %v158_v12 }
   0xd   :  { %160 = vmatprep.subr.bf16.mxu0 %v199_v0  ;;  %181 = vmatprep.subr.bf16.mxu1 %v199_v0 }
  0x10   :  { %162 = vmatpush1.bf16.msra.mxu0 %v161_v16  ;;  %190 = vmatpush1.bf16.msra.mxu1 %v161_v16 }
  0x11   :  { %163 = vmatprep.subr.bf16.mxu0 %v199_v0  ;;  %182 = vmatprep.subr.bf16.mxu1 %v199_v0 }
  0x14   :  { %165 = vmatpush1.bf16.msra.mxu0 %v164_v20  ;;  %191 = vmatpush1.bf16.msra.mxu1 %v164_v20 }
  0x15   :  { %166 = vmatprep.subr.bf16.mxu0 %v199_v0  ;;  %183 = vmatprep.subr.bf16.mxu1 %v199_v0 }
  0x18   :  { %168 = vmatpush1.bf16.msra.mxu0 %v167_v23  ;;  %192 = vmatpush1.bf16.msra.mxu1 %v167_v23 }
  0x19   :  { %169 = vmatprep.subr.bf16.mxu0 %v199_v0  ;;  %184 = vmatprep.subr.bf16.mxu1 %v199_v0 }
  0x1c   :  { %171 = vmatpush1.bf16.msra.mxu0 %v170_v26  ;;  %193 = vmatpush1.bf16.msra.mxu1 %v170_v26 }
  0x1d   :  { %172 = vmatprep.subr.bf16.mxu0 %v199_v0  ;;  %185 = vmatprep.subr.bf16.mxu1 %v199_v0 }
  0x20   :  { %174 = vmatpush1.bf16.msra.mxu0 %v173_v29  ;;  %194 = vmatpush1.bf16.msra.mxu1 %v173_v29 }
  0x21   :  { %175 = vmatprep.subr.bf16.mxu0 %v199_v0  ;;  %186 = vmatprep.subr.bf16.mxu1 %v199_v0 }
  0x24   :  { %177 = vmatpush1.bf16.msra.mxu0 %v176_v32  ;;  %195 = vmatpush1.bf16.msra.mxu1 %v176_v32 }
  0x27   :  { %123 = vmatmul.mubr.f32.vlgmr.msra.gmra.mrb[0].mxu0 %v17_v33  ;;  %128 = vmatmul.mubr.f32.vlgmr.msra.gmra.mrb[0].mxu1 %v19_v34 }
  0x86   :  { %v44_v35 = vpop.permute.xlu0 %43 }
  0x8a   :  { %v49_v36 = vpop.permute.xlu0 %48 }
  0xfa   :  { %v124_v37 = vpop.f32.mrb[0].mxu0  ;;  %v129_v38 = vpop.f32.mrb[0].mxu1 }
  0xfb   :  { %v125_v39 = vadd.f32 %v124_v37, %v44_v35  ;;  %v130_v40 = vadd.f32 %v129_v38, %v49_v36  ;;  %v126_v41 = vpop.f32.mrb[1].mxu0  ;;  %v131_v42 = vpop.f32.mrb[1].mxu1 }
  0xfd   :  { %vm133_vm1 = vcmp.gt.f32.partialorder %v125_v39, 0.0  ;;  %v135_v45 = vmul.f32 0.1, %v125_v39  ;;  %vm134_vm2 = vcmp.gt.f32.partialorder %v130_v40, 0.0  ;;  %v136_v46 = vmul.f32 0.1, %v130_v40 }
  0xff   :  { %v137_v47 = vsel %vm133_vm1, %v125_v39, %v135_v45  ;;  %v138_v48 = vsel %vm134_vm2, %v130_v40, %v136_v46 }
 0x100   :  { %v141_v49 = vadd.f32 %v139_v43, %v137_v47  ;;  %v142_v50 = vadd.f32 %v140_v44, %v138_v48 }
 0x102   :  { %143 = vst [vmem:[%s332_s4] sm:$0xff] %v141_v49  ;;  %144 = vst [vmem:[%s332_s4 + $0x8] sm:$0xff] %v142_v50 }

// kernel: yolo_forward.17
= control target key start
LH: loop header
LB: loop body
LE: loop exit
PB: predicated region body
PF: predicated region fallthrough
CT: control target
= control target key end

     0   :  { %v124_v0 = vmov 0.0|0.0   ;;  %vm125_vm0 = vmmov 0   ;;  %v126_v3 = vmov 0.0   ;;  %v127_v5 = vmov 0   ;;  %s163_s1 = inlined_call_operand.vmem [shape: f32[16,128], index: 1, kind: input, shape index: {}]   ;;  %s164_s2 = inlined_call_operand.vmem [shape: f32[8,1], index: 2, kind: input, shape index: {}]   ;;  %s165_s0 = inlined_call_operand.vmem [shape: f32[8,16], index: 0, kind: input, shape index: {}]   ;;  %s166_s3 = inlined_call_operand.vmem [shape: f32[8,128], index: 3, kind: output, shape index: {}]  }
   0x1   :  { %116 = vmatprep.subr.bf16.mxu0 %v124_v0  ;;  %v15_v1 = vld [vmem:[%s163_s1] sm:$0xff]  ;;  %v16_v2 = vld [vmem:[%s163_s1 + $0x8] sm:$0xff]  ;;  %113 = vmatprep.mubr.msk.f32.mxu0 %vm125_vm0, %v126_v3  ;;  %vm23_vm1 = vcmask 130048  }
   0x2   :  { %v117_v4 = vpack.c.bf16 %v16_v2, %v15_v1  ;;  %123 = vset.pattern.permute.xlu0 %v127_v5  ;;  %v17_v6 = vld [vmem:[%s164_s2] sm:$0xff] }
   0x3   :  { %20 = vperm.xlu0 %123, %v17_v6   ;;  %v14_v7 = vld [vmem:[%s165_s0] sm:$0xff] }
   0x4   :  { %118 = vmatpush3.bf16.msra.mxu0 %v117_v4 }
   0x7   :  { %114 = vmatmul.mubr.msk.f32.vlgmr.msra.gmra.mrb[0].mxu0 %vm23_vm1, %v14_v7 }
  0x82   :  { %v21_v8 = vpop.permute.xlu0 %20 }
  0xda   :  { %v93_v9 = vpop.f32.mrb[0].mxu0 }
  0xdb   :  { %v94_v10 = vadd.f32 %v93_v9, %v21_v8  ;;  %v115_v11 = vpop.f32.mrb[1].mxu0 }
  0xdd   :  { %vm97_vm2 = vcmp.gt.f32.partialorder %v94_v10, 0.0  ;;  %v98_v12 = vmul.f32 0.1, %v94_v10 }
  0xdf   :  { %v99_v13 = vsel %vm97_vm2, %v94_v10, %v98_v12 }
  0xe0   :  { %100 = vst [vmem:[%s166_s3] sm:$0xff] %v99_v13 }

// kernel: yolo_forward.18
= control target key start
LH: loop header
LB: loop body
LE: loop exit
PB: predicated region body
PF: predicated region fallthrough
CT: control target
= control target key end

     0   :  { %s540_s12 = smov 0   ;;  %s542_s13 = smov 0   ;;  %s625_s0 = inlined_call_operand.vmem [shape: f32[24,16], index: 0, kind: input, shape index: {}]   ;;  %s626_s1 = inlined_call_operand.vmem [shape: f32[16,512], index: 1, kind: input, shape index: {}]   ;;  %s627_s2 = inlined_call_operand.vmem [shape: f32[24,1], index: 2, kind: input, shape index: {}]   ;;  %s628_s3 = inlined_call_operand.vmem [shape: f32[24,512], index: 3, kind: output, shape index: {}]  }
   0x1   :  { %s544_s14 = smov 0  }
   0x2 LB: > { %s424_s15 = sadd.s32 4294967295, %s514_s14   ;;  %s557_s16 = sadd.s32 1, %s514_s14   ;;  %s514_s14 = sphi %s544_s14, %s632_s14   ;;  %s510_s13 = sphi %s542_s13, %s631_s13   ;;  %s506_s12 = sphi %s540_s12, %s630_s12  }
   0x3   : > { %s38_s17 = ssub.s32 %s514_s14, %s557_s16  ;;  %s41_s18 = sadd.s32 1, %s510_s13 }
   0x4   : > { %p39_p0 = scmp.eq.s32.totalorder %s38_s17, 0  ;;  %p48_p1 = scmp.ne.s32.totalorder %s510_s13, %s506_s12 }
   0x5   : > { %p49_p2 = scmp.eq.s32.totalorder %s514_s14, 0  ;;  %p99_p3 = scmp.eq.s32.totalorder %s424_s15, 3 }
   0x6   : > { %s568_s19 = scalar_select %p39_p0, %s510_s13, %s41_s18  }
   0x7   : > { %p50_p4 = por %p49_p2, %p48_p1  ;;  %p570_p5 = por %p99_p3, %p48_p1 }
   0x8   : > { %p427_p6 = scmp.ge.s32.totalorder %s514_s14, 4 }
   0xa   : > { %127 = sbr.rel (%p427_p6) target bundleno = 24 (0x18), region = 24 }
  0x11   : > { %130 = sbr.rel (!%p50_p4) target bundleno = 24 (0x18), region = 28  ;;  %s132_s21 = sand.u32 (%p50_p4), 1, %s510_s13  }
  0x12   : > { %s429_s22 = sshll.u32 (%p50_p4), %s514_s14, 3  ;;  %s428_s23 = sshll.u32 (%p50_p4), %s132_s21, 4 }
  0x13   : > { %s136_s26 = scalar_lea.vmem (%p50_p4), %s626_s1, %s429_s22  ;;  %s134_s27 = scalar_lea.vmem (%p50_p4), [#allocation2], %s428_s23 }
  0x14   : > { %v166_v0 = vld [vmem:[%s136_s26] sm:$0xff] (%p50_p4) }
  0x15   : > { %v168_v1 = vld [vmem:[%s136_s26 + $0x20] sm:$0xff] (%p50_p4)  ;;  %167 = vst [vmem:[%s134_s27] sm:$0xff] (%p50_p4), %v166_v0 }
  0x16   : > { %169 = vst [vmem:[%s134_s27 + $0x8] sm:$0xff] (%p50_p4), %v168_v1 }
  0x18 PF: > { %p430_p7 = scmp.ge.s32.totalorder %s514_s14, 1  ;;  %p174_p8 = scmp.lt.s32.totalorder %s514_s14, 5 }
  0x1a   : > { %p175_p9 = pnand %p430_p7, %p174_p8 }
  0x1b   : > { %s181_s28 = sand.u32 (!%p175_p9), 1, %s506_s12   ;;  %v516_v2 = vmov (!%p175_p9), 0.0|0.0   ;;  %v208_v3 = vld [vmem:[%s627_s2] sm:$0xff] (!%p175_p9)  ;;  %vm517_vm0 = vmmov (!%p175_p9), 0   ;;  %v518_v4 = vmov (!%p175_p9), 0.0   ;;  %v210_v5 = vld [vmem:[%s627_s2 + $0x10] sm:$0xff] (!%p175_p9) }
  0x1c   : > { %178 = sbr.rel (%p175_p9) target bundleno = 263 (0x107), region = 66  ;;  %456 = vmatprep.subr.bf16.mxu0 (!%p175_p9), %v516_v2  ;;  %459 = vmatprep.subr.bf16.mxu1 (!%p175_p9), %v516_v2  ;;  %s431_s29 = sshll.u32 (!%p175_p9), %s181_s28, 4  ;;  %v519_v8 = vmov (!%p175_p9), 0   ;;  %v209_v10 = vld [vmem:[%s627_s2 + $0x8] sm:$0xff] (!%p175_p9)  ;;  %v203_v11 = vld [vmem:[%s625_s0] sm:$0xff] (!%p175_p9)  ;;  %vm226_vm1 = vcmask (!%p175_p9), 130048  }
  0x1d   : > { %447 = vmatprep.mubr.msk.f32.mxu0 (!%p175_p9), %vm517_vm0, %v518_v4  ;;  %450 = vmatprep.mubr.msk.f32.mxu1 (!%p175_p9), %vm517_vm0, %v518_v4  ;;  %s183_s7 = scalar_lea.vmem (!%p175_p9), [#allocation2], %s431_s29  ;;  %v204_v12 = vld [vmem:[%s625_s0 + $0x8] sm:$0xff] (!%p175_p9)  ;;  %v205_v13 = vld [vmem:[%s625_s0 + $0x10] sm:$0xff] (!%p175_p9)  ;;  %s461_s23 = smul.u32 (!%p175_p9), 24, %s181_s28 }
  0x1e   : > { %v206_v6 = vld [vmem:[%s183_s7] sm:$0xff] (!%p175_p9)  ;;  %v207_v7 = vld [vmem:[%s183_s7 + $0x8] sm:$0xff] (!%p175_p9)  ;;  %490 = vset.pattern.permute.xlu0 (!%p175_p9), %v519_v8  ;;  %491 = vset.pattern.permute.xlu1 (!%p175_p9), %v519_v8 }
  0x1f   : > { %v457_v9 = vpack.c.bf16 (!%p175_p9), %v207_v7, %v206_v6  ;;  %213 = vperm.xlu0 (!%p175_p9), %490, %v208_v3   ;;  %223 = vperm.xlu1 (!%p175_p9), %491, %v210_v5   ;;  %s202_s24 = scalar_lea.vmem (!%p175_p9), [#allocation3], %s461_s23 }
  0x21   : > { %458 = vmatpush3.bf16.msra.mxu0 (!%p175_p9), %v457_v9  ;;  %460 = vmatpush3.bf16.msra.mxu1 (!%p175_p9), %v457_v9 }
  0x23   : > { %218 = vperm.xlu0 %490, %v209_v10   ;;  %s435_s12 = sshll.u32 (%p570_p5), %s424_s15, 3 }
  0x24   : > { %448 = vmatmul.mubr.msk.f32.vlgmr.msra.gmra.mrb[0].mxu0 %vm226_vm1, %v203_v11  ;;  %451 = vmatmul.mubr.msk.f32.vlgmr.msra.gmra.mrb[0].mxu1 %vm226_vm1, %v204_v12  ;;  %s327_s27 = scalar_lea.vmem (%p570_p5), %s628_s3, %s435_s12 }
  0x25   : > { %453 = vmatprep.mubr.msk.f32.mxu1 %vm517_vm0, %v518_v4 }
  0x28   : > { %454 = vmatmul.mubr.msk.f32.gmra.mrb[2].mxu1 %vm226_vm1, %v205_v13 }
  0x9e   : > { %v214_v14 = vpop.permute.xlu0 %213  ;;  %v224_v22 = vpop.permute.xlu1 %223 }
  0xa2   : > { %v219_v15 = vpop.permute.xlu0 %218 }
  0xf7   : > { %v302_v16 = vpop.f32.mrb[0].mxu0  ;;  %v307_v17 = vpop.f32.mrb[0].mxu1 }
  0xf8   : > { %v303_v18 = vadd.f32 %v302_v16, %v214_v14  ;;  %v308_v19 = vadd.f32 %v307_v17, %v219_v15  ;;  %v452_v20 = vpop.f32.mrb[1].mxu1  ;;  %v449_v21 = vpop.f32.mrb[1].mxu0  ;;  %325 = sbr.rel (!%p570_p5) target bundleno = 263 (0x107), region = 74 }
  0xfa   : > { %316 = vst [vmem:[%s202_s24] sm:$0xff] %v303_v18  ;;  %317 = vst [vmem:[%s202_s24 + $0x8] sm:$0xff] %v308_v19 }
  0xfb   : > { %v312_v23 = vpop.f32.mrb[2].mxu1 }
  0xfc   : > { %v313_v24 = vadd.f32 %v312_v23, %v224_v22  ;;  %v455_v25 = vpop.f32.mrb[3].mxu1 }
  0xfe   : > { %318 = vst [vmem:[%s202_s24 + $0x10] sm:$0xff] %v313_v24 }
 0x101   : > { %v359_v26 = vld [vmem:[%s202_s24] sm:$0xff]  ;;  %v361_v27 = vld [vmem:[%s202_s24 + $0x8] sm:$0xff] }
 0x102   : > { %360 = vst [vmem:[%s327_s27] sm:$0xff] %v359_v26  ;;  %362 = vst [vmem:[%s327_s27 + $0x20] sm:$0xff] %v361_v27 }
 0x105   : > { %v363_v28 = vld [vmem:[%s202_s24 + $0x10] sm:$0xff] }
 0x106   : > { %364 = vst [vmem:[%s327_s27 + $0x40] sm:$0xff] %v363_v28 }
 0x107 PF: > { %p10_p10 = scmp.ge.s32.totalorder %s557_s16, 6   ;;  %s630_s12 = smov %s510_s13 }
 0x108   : > { %s631_s13 = smov %s568_s19  ;;  %s632_s14 = smov %s557_s16 }
 0x109   :  { %12 = sbr.rel (!%p10_p10) target bundleno = 2 (0x2), region = 143 }

// kernel: yolo_forward.19
= control target key start
LH: loop header
LB: loop body
LE: loop exit
PB: predicated region body
PF: predicated region fallthrough
CT: control target
= control target key end

     0   :  { %v106_v0 = vlaneseq  ;;  %v566_v2 = vmov 1983009808   ;;  %v567_v19 = vmov 0.0   ;;  %vm421_vm6 = vcmask 1041408   ;;  %s987_s0 = inlined_call_operand.vmem [shape: f32[2,8,768], index: 0, kind: input, shape index: {}]   ;;  %s988_s1 = inlined_call_operand.vmem [shape: f32[1,2,768], index: 1, kind: input, shape index: {}]   ;;  %s989_s2 = inlined_call_operand.vmem [shape: f32[1,2,768], index: 2, kind: input, shape index: {}]   ;;  %s990_s3 = inlined_call_operand.vmem [shape: f32[2,6,768], index: 3, kind: output, shape index: {}]  }
   0x1   :  { %v14_v1 = vld [vmem:[%s987_s0] sm:$0xff]  ;;  %v104_v3 = vunpack.c.l.s4 %v566_v2  ;;  %v15_v5 = vld [vmem:[%s987_s0 + $0x8] sm:$0xff]  ;;  %v597_v8 = vld [vmem:[%s987_s0 + $0x10] sm:$0xff]  ;;  %vm434_vm7 = vcmask 1043456   ;;  %vm447_vm9 = vcmask 1044480  }
   0x2   :  { %v476_v4 = vmul.f32 -1.442695, %v14_v1  ;;  %v229_v6 = vrot.slane %v14_v1, 7  ;;  %v477_v7 = vmul.f32 -1.442695, %v15_v5  ;;  %v107_v10 = vshrl.u32 %v106_v0, 7 }
   0x3   :  { %v105_v9 = vunpack.c.0.s8 %v104_v3  ;;  %v230_v11 = vrot.slane %v15_v5, 7  ;;  %v478_v13 = vmul.f32 -1.442695, %v597_v8  ;;  %v98_v14 = vld [vmem:[%s988_s1] sm:$0xff]  ;;  %v145_v17 = vmul.f32 1.442695, %v14_v1 }
   0x4   :  { %494 = vpow2.f32 %v476_v4  ;;  %vm253_vm0 = vcmp.gt.f32.partialorder %v14_v1, %v229_v6  ;;  %v169_v15 = vld [vmem:[%s989_s2] sm:$0xff]  ;;  %v147_v22 = vmul.f32 1.442695, %v15_v5  ;;  %v612_v23 = vld [vmem:[%s987_s0 + $0x18] sm:$0xff]  ;;  %v102_v25 = vcombine.high %v98_v14, %v98_v14  ;;  %v652_v50 = vld [vmem:[%s987_s0 + $0x28] sm:$0xff] }
   0x5   :  { %v265_v12 = vsel %vm253_vm0, %v14_v1, %v229_v6  ;;  %496 = vpow2.f32 %v477_v7  ;;  %vm254_vm1 = vcmp.gt.f32.partialorder %v15_v5, %v230_v11  ;;  %v606_v16 = vsub.s32 %v105_v9, %v107_v10  ;;  %v620_v30 = vld [vmem:[%s987_s0 + $0x20] sm:$0xff]  ;;  %v493_v9 = vld [vmem:[%s989_s2 + $0x8] ss:$0 sps:$4 sm:$0xff]   ;;  %v710_v10 = vld [vmem:[%s987_s0 + $0x30] sm:$0xff] }
   0x6   :  { %v266_v18 = vsel %vm254_vm1, %v15_v5, %v230_v11  ;;  %v277_v20 = vsel %vm253_vm0, 1.0, %v567_v19  ;;  %v301_v21 = vrot.slane %v265_v12, 7  ;;  %v173_v24 = vcombine.low %v169_v15, %v169_v15  ;;  %v742_v34 = vld [vmem:[%s987_s0 + $0x38] sm:$0xff] }
   0x7   :  { %498 = vpow2.f32 %v478_v13  ;;  %v278_v26 = vsel %vm254_vm1, 1.0, %v567_v19  ;;  %v302_v27 = vrot.slane %v266_v18, 7  ;;  %v149_v28 = vmul.f32 1.442695, %v597_v8 }
   0x8   :  { %v231_v29 = vrot.slane %v597_v8, 7  ;;  %v623_v31 = vrot.slane %v98_v14, %v606_v16  ;;  %500 = vpow2.f32 %v145_v17  ;;  %v349_v32 = vrot.slane %v277_v20, 7 }
   0x9   :  { %v479_v33 = vmul.f32 -1.442695, %v612_v23  ;;  %vm626_vm2 = vcmp.gt.f32.partialorder %v14_v1, %v301_v21  ;;  %502 = vpow2.f32 %v147_v22  ;;  %v232_v35 = vrot.slane %v612_v23, 7 }
   0xa   :  { %vm255_vm3 = vcmp.gt.f32.partialorder %v597_v8, %v231_v29  ;;  %v350_v37 = vrot.slane %v278_v26, 7  ;;  %v480_v39 = vmul.f32 -1.442695, %v620_v30  ;;  %vm634_vm4 = vcmp.gt.f32.partialorder %v15_v5, %v302_v27 }
   0xb   :  { %v267_v38 = vsel %vm255_vm3, %v597_v8, %v231_v29  ;;  %504 = vpow2.f32 %v479_v33  ;;  %v151_v42 = vmul.f32 1.442695, %v612_v23  ;;  %v279_v44 = vsel %vm255_vm3, 1.0, %v567_v19 }
   0xc   :  { %506 = vpow2.f32 %v149_v28  ;;  %v303_v45 = vrot.slane %v267_v38, 7  ;;  %vm641_vm5 = vcmp.gt.f32.partialorder %v612_v23, %v232_v35  ;;  %v646_v47 = vrot.slane %v173_v24, %v606_v16  ;;  %v726_v22 = vld.sshfl [vmem:[%s988_s1 + $0x8] sm:$0x33 pattern:$0x76325410] }
   0xd   :  { %508 = vpow2.f32 %v480_v39  ;;  %v153_v49 = vmul.f32 1.442695, %v620_v30  ;;  %v656_v51 = vsel %vm626_vm2, 2.0, %v349_v32  ;;  %v660_v52 = vcombine.high %v623_v31, %v623_v31 }
   0xe   :  { %v495_v36 = vpop.eup %494  ;;  %v663_v53 = vrot.slane %v102_v25, %v606_v16  ;;  %v268_v54 = vsel %vm641_vm5, %v612_v23, %v232_v35  ;;  %v670_v55 = vsel %vm634_vm4, 2.0, %v350_v37  ;;  %v673_v56 = vrot.slane %v169_v15, %v606_v16 }
   0xf   :  { %v62_v40 = vadd.f32 1.0, %v495_v36  ;;  %v497_v43 = vpop.eup %496  ;;  %v351_v57 = vrot.slane %v279_v44, 7  ;;  %vm676_vm8 = vcmp.gt.f32.partialorder %v597_v8, %v303_v45  ;;  %v233_v60 = vrot.slane %v620_v30, 7 }
  0x10   :  { %v63_v48 = vadd.f32 1.0, %v497_v43  ;;  %v481_v61 = vmul.f32 -1.442695, %v652_v50  ;;  %v280_v63 = vsel %vm641_vm5, 1.0, %v567_v19  ;;  %v304_v0 = vrot.slane %v268_v54, 7 }
  0x11   :  { %510 = vrcp.f32 %v62_v40  ;;  %v499_v58 = vpop.eup %498  ;;  %v397_v2 = vrot.slane %v656_v51, 2  ;;  %v688_v3 = vcombine.high %v646_v47, %v646_v47  ;;  %vm691_vm10 = vcmp.gt.f32.partialorder %v620_v30, %v233_v60 }
  0x12   :  { %512 = vrcp.f32 %v63_v48  ;;  %v64_v62 = vadd.f32 1.0, %v499_v58  ;;  %v501_v1 = vpop.eup %500  ;;  %v398_v6 = vrot.slane %v670_v55, 2  ;;  %v698_v7 = vsel %vm676_vm8, 2.0, %v351_v57 }
  0x13   :  { %514 = vpow2.f32 %v151_v42  ;;  %v503_v5 = vpop.eup %502  ;;  %v702_v8 = vcombine.high %v663_v53, %v663_v53  ;;  %v352_v12 = vrot.slane %v280_v63, 7  ;;  %v269_v13 = vsel %vm691_vm10, %v620_v30, %v233_v60 }
  0x14   :  { %516 = vpow2.f32 %v153_v49  ;;  %v155_v14 = vmul.f32 1.442695, %v652_v50  ;;  %v234_v15 = vrot.slane %v652_v50, 7  ;;  %v205_v18 = vmul.f32 %v501_v1, %v646_v47 }
  0x15   :  { %518 = vpow2.f32 %v481_v61  ;;  %v505_v11 = vpop.eup %504  ;;  %v720_v21 = vcombine.high %v673_v56, %v673_v56  ;;  %vm328_vm11 = vcmp.gt.f32.partialorder %v612_v23, %v304_v0  ;;  %v206_v25 = vmul.f32 %v503_v5, %v688_v3  ;;  %v782_v0 = vld [vmem:[%s987_s0 + $0x40] sm:$0xff] }
  0x16   :  { %520 = vrcp.f32 %v64_v62  ;;  %v507_v17 = vpop.eup %506  ;;  %v65_v20 = vadd.f32 1.0, %v505_v11  ;;  %v399_v26 = vrot.slane %v698_v7, 2  ;;  %vm731_vm12 = vcmp.gt.f32.partialorder %v652_v50, %v234_v15 }
  0x17   :  { %v509_v24 = vpop.eup %508  ;;  %v482_v28 = vmul.f32 -1.442695, %v710_v10  ;;  %v737_v32 = vrot.slane %v493_v9, %v606_v16  ;;  %v305_v33 = vrot.slane %v269_v13, 7  ;;  %v745_v36 = vsel %vm328_vm11, 2.0, %v352_v12  ;;  %v881_v12 = vld [vmem:[%s987_s0 + $0x58] sm:$0xff] }
  0x18   :  { %522 = vrcp.f32 %v65_v20  ;;  %v66_v23 = vadd.f32 1.0, %v509_v24  ;;  %v281_v37 = vsel %vm691_vm10, 1.0, %v567_v19  ;;  %v207_v39 = vmul.f32 %v507_v17, %v673_v56 }
  0x19   :  { %524 = vpow2.f32 %v155_v14  ;;  %v753_v16 = vcombine.high %v726_v22, %v726_v22  ;;  %v270_v40 = vsel %vm731_vm12, %v652_v50, %v234_v15  ;;  %v483_v44 = vmul.f32 -1.442695, %v742_v34 }
  0x1a   :  { %526 = vrcp.f32 %v66_v23  ;;  %vm763_vm13 = vcmp.gt.f32.partialorder %v620_v30, %v305_v33  ;;  %v353_v49 = vrot.slane %v281_v37, 7  ;;  %v235_v51 = vrot.slane %v710_v10, 7 }
  0x1b   :  { %v511_v29 = vpop.eup %510  ;;  %528 = vpow2.f32 %v482_v28  ;;  %v282_v58 = vsel %vm731_vm12, 1.0, %v567_v19  ;;  %v306_v59 = vrot.slane %v270_v40, 7  ;;  %v400_v61 = vrot.slane %v745_v36, 2 }
  0x1c   :  { %v133_v35 = vadd.f32 %v511_v29, %v623_v31  ;;  %v513_v38 = vpop.eup %512  ;;  %v157_v63 = vmul.f32 1.442695, %v710_v10  ;;  %530 = vpow2.f32 %v483_v44  ;;  %v377_v5 = vsel %vm763_vm13, 2.0, %v353_v49 }
  0x1d   :  { %v515_v41 = vpop.eup %514  ;;  %v134_v43 = vadd.f32 %v513_v38, %v660_v52  ;;  %v354_v7 = vrot.slane %v282_v58, 7  ;;  %v236_v9 = vrot.slane %v742_v34, 7  ;;  %vm795_vm14 = vcmp.gt.f32.partialorder %v652_v50, %v306_v59  ;;  %v814_v50 = vld [vmem:[%s987_s0 + $0x48] sm:$0xff] }
  0x1e   :  { %v422_v42 = vsel %vm421_vm6, %v133_v35, %v205_v18  ;;  %v517_v45 = vpop.eup %516  ;;  %v208_v4 = vmul.f32 %v515_v41, %v720_v21  ;;  %vm800_vm15 = vcmp.gt.f32.partialorder %v710_v10, %v235_v51  ;;  %v484_v13 = vmul.f32 -1.442695, %v782_v0 }
  0x1f   :  { %v435_v46 = vsel %vm434_vm7, %v422_v42, %v511_v29  ;;  %v519_v54 = vpop.eup %518  ;;  %v423_v57 = vsel %vm421_vm6, %v134_v43, %v206_v25  ;;  %v209_v17 = vmul.f32 %v517_v45, %v737_v32  ;;  %v809_v18 = vcombine.high %v737_v32, %v737_v32 }
  0x20   :  { %v448_v55 = vsel %vm447_vm9, %v435_v46, %v397_v2  ;;  %v521_v60 = vpop.eup %520  ;;  %v436_v30 = vsel %vm434_vm7, %v423_v57, %v513_v38  ;;  %v67_v62 = vadd.f32 1.0, %v519_v54  ;;  %v159_v27 = vmul.f32 1.442695, %v742_v34  ;;  %v854_v54 = vld [vmem:[%s987_s0 + $0x50] sm:$0xff] }
  0x21   :  { %460 = vst [vmem:[%s990_s3] sm:$0x3f] %v448_v55  ;;  %v449_v1 = vsel %vm447_vm9, %v436_v30, %v398_v6  ;;  %v135_v2 = vadd.f32 %v521_v60, %v663_v53  ;;  %vm820_vm0 = vcmp.gt.f32.partialorder %v742_v34, %v236_v9  ;;  %v401_v23 = vrot.slane %v377_v5, 2 }
  0x22   :  { %461 = vst [vmem:[%s990_s3 + $0x8] sm:$0x3f] %v449_v1  ;;  %532 = vrcp.f32 %v67_v62  ;;  %v523_v14 = vpop.eup %522  ;;  %v378_v33 = vsel %vm795_vm14, 2.0, %v354_v7  ;;  %v283_v38 = vsel %vm800_vm15, 1.0, %v567_v19  ;;  %v272_v42 = vsel %vm820_vm0, %v742_v34, %v236_v9 }
  0x23   :  { %v424_v11 = vsel %vm421_vm6, %v135_v2, %v207_v39  ;;  %534 = vpow2.f32 %v157_v63  ;;  %v525_v20 = vpop.eup %524  ;;  %v136_v25 = vadd.f32 %v523_v14, %v702_v8  ;;  %v485_v39 = vmul.f32 -1.442695, %v814_v50 }
  0x24   :  { %v437_v15 = vsel %vm434_vm7, %v424_v11, %v521_v60  ;;  %v527_v29 = vpop.eup %526  ;;  %536 = vpow2.f32 %v484_v13  ;;  %v237_v43 = vrot.slane %v782_v0, 7  ;;  %v161_v46 = vmul.f32 1.442695, %v782_v0 }
  0x25   :  { %v450_v24 = vsel %vm447_vm9, %v437_v15, %v399_v26  ;;  %v271_v26 = vsel %vm800_vm15, %v710_v10, %v235_v51  ;;  %v529_v35 = vpop.eup %528  ;;  %v425_v36 = vsel %vm421_vm6, %v136_v25, %v208_v4  ;;  %v137_v37 = vadd.f32 %v527_v29, %v726_v22 }
  0x26   :  { %462 = vst [vmem:[%s990_s3 + $0x10] sm:$0x3f] %v450_v24  ;;  %v438_v40 = vsel %vm434_vm7, %v425_v36, %v523_v14  ;;  %v68_v41 = vadd.f32 1.0, %v529_v35  ;;  %538 = vpow2.f32 %v159_v27  ;;  %v210_v49 = vmul.f32 %v525_v20, %v809_v18  ;;  %v531_v55 = vpop.eup %530 }
  0x27   :  { %v451_v44 = vsel %vm447_vm9, %v438_v40, %v400_v61  ;;  %v426_v45 = vsel %vm421_vm6, %v137_v37, %v209_v17  ;;  %v307_v51 = vrot.slane %v271_v26, 7  ;;  %v284_v58 = vsel %vm820_vm0, 1.0, %v567_v19 }
  0x28   :  { %463 = vst [vmem:[%s990_s3 + $0x18] sm:$0x3f] %v451_v44  ;;  %v439_v48 = vsel %vm434_vm7, %v426_v45, %v527_v29  ;;  %540 = vrcp.f32 %v68_v41  ;;  %v308_v59 = vrot.slane %v272_v42, 7  ;;  %v402_v30 = vrot.slane %v378_v33, 2 }
  0x29   :  { %v452_v57 = vsel %vm447_vm9, %v439_v48, %v401_v23  ;;  %542 = vpow2.f32 %v485_v39  ;;  %v69_v61 = vadd.f32 1.0, %v531_v55  ;;  %vm864_vm1 = vcmp.gt.f32.partialorder %v782_v0, %v237_v43 }
  0x2a   :  { %464 = vst [vmem:[%s990_s3 + $0x20] sm:$0x3f] %v452_v57  ;;  %v355_v1 = vrot.slane %v283_v38, 7  ;;  %544 = vpow2.f32 %v161_v46  ;;  %v486_v2 = vmul.f32 -1.442695, %v854_v54  ;;  %vm331_vm2 = vcmp.gt.f32.partialorder %v710_v10, %v307_v51 }
  0x2b   :  { %546 = vrcp.f32 %v69_v61  ;;  %v356_v5 = vrot.slane %v284_v58, 7  ;;  %v163_v7 = vmul.f32 1.442695, %v814_v50  ;;  %vm332_vm3 = vcmp.gt.f32.partialorder %v742_v34, %v308_v59 }
  0x2c   :  { %v533_v60 = vpop.eup %532  ;;  %v273_v11 = vsel %vm864_vm1, %v782_v0, %v237_v43  ;;  %v238_v6 = vrot.slane %v814_v50, 7  ;;  %548 = vpow2.f32 %v486_v2  ;;  %v379_v15 = vsel %vm331_vm2, 2.0, %v355_v1 }
  0x2d   :  { %v138_v63 = vadd.f32 %v533_v60, %v753_v16  ;;  %v535_v4 = vpop.eup %534  ;;  %v380_v34 = vsel %vm332_vm3, 2.0, %v356_v5  ;;  %v309_v20 = vrot.slane %v273_v11, 7  ;;  %550 = vpow2.f32 %v163_v7 }
  0x2e   :  { %v537_v10 = vpop.eup %536  ;;  %v487_v24 = vmul.f32 -1.442695, %v881_v12  ;;  %v211_v27 = vmul.f32 %v535_v4, %v646_v47  ;;  %v285_v28 = vsel %vm864_vm1, 1.0, %v567_v19  ;;  %vm894_vm4 = vcmp.gt.f32.partialorder %v814_v50, %v238_v6 }
  0x2f   :  { %v427_v9 = vsel %vm421_vm6, %v138_v63, %v210_v49  ;;  %v70_v17 = vadd.f32 1.0, %v537_v10  ;;  %v239_v33 = vrot.slane %v854_v54, 7  ;;  %v403_v36 = vrot.slane %v379_v15, 2 }
  0x30   :  { %v440_v13 = vsel %vm434_vm7, %v427_v9, %v533_v60  ;;  %v539_v25 = vpop.eup %538  ;;  %v404_v37 = vrot.slane %v380_v34, 2  ;;  %v165_v47 = vmul.f32 1.442695, %v854_v54  ;;  %vm902_vm5 = vcmp.gt.f32.partialorder %v782_v0, %v309_v20 }
  0x31   :  { %v453_v14 = vsel %vm447_vm9, %v440_v13, %v402_v30  ;;  %552 = vrcp.f32 %v70_v17  ;;  %v357_v39 = vrot.slane %v285_v28, 7  ;;  %v274_v41 = vsel %vm894_vm4, %v814_v50, %v238_v6 }
  0x32   :  { %465 = vst [vmem:[%s990_s3 + $0x28] sm:$0x3f] %v453_v14  ;;  %v541_v23 = vpop.eup %540  ;;  %554 = vpow2.f32 %v487_v24  ;;  %v286_v44 = vsel %vm894_vm4, 1.0, %v567_v19  ;;  %v167_v0 = vmul.f32 1.442695, %v881_v12  ;;  %vm917_vm8 = vcmp.gt.f32.partialorder %v854_v54, %v239_v33 }
  0x33   :  { %v543_v26 = vpop.eup %542  ;;  %v139_v35 = vadd.f32 %v541_v23, %v623_v31  ;;  %v212_v31 = vmul.f32 %v539_v25, %v688_v3  ;;  %v240_v49 = vrot.slane %v881_v12, 7  ;;  %v310_v55 = vrot.slane %v274_v41, 7 }
  0x34   :  { %v71_v40 = vadd.f32 1.0, %v543_v26  ;;  %v545_v42 = vpop.eup %544  ;;  %v381_v58 = vsel %vm902_vm5, 2.0, %v357_v39  ;;  %v358_v60 = vrot.slane %v286_v44, 7  ;;  %v275_v61 = vsel %vm917_vm8, %v854_v54, %v239_v33 }
  0x35   :  { %v428_v43 = vsel %vm421_vm6, %v139_v35, %v211_v27  ;;  %v547_v45 = vpop.eup %546  ;;  %v213_v63 = vmul.f32 %v545_v42, %v673_v56  ;;  %vm936_vm10 = vcmp.gt.f32.partialorder %v881_v12, %v240_v49  ;;  %vm334_vm11 = vcmp.gt.f32.partialorder %v814_v50, %v310_v55 }
  0x36   :  { %v441_v46 = vsel %vm434_vm7, %v428_v43, %v541_v23  ;;  %556 = vrcp.f32 %v71_v40  ;;  %v140_v3 = vadd.f32 %v547_v45, %v660_v52  ;;  %v549_v57 = vpop.eup %548  ;;  %v405_v56 = vrot.slane %v381_v58, 2 }
  0x37   :  { %v454_v51 = vsel %vm447_vm9, %v441_v46, %v403_v36  ;;  %558 = vpow2.f32 %v165_v47  ;;  %v72_v30 = vadd.f32 1.0, %v549_v57  ;;  %v551_v62 = vpop.eup %550  ;;  %v287_v9 = vsel %vm917_vm8, 1.0, %v567_v19 }
  0x38   :  { %466 = vst [vmem:[%s990_s3 + $0x30] sm:$0x3f] %v454_v51  ;;  %v429_v59 = vsel %vm421_vm6, %v140_v3, %v212_v31  ;;  %560 = vpow2.f32 %v167_v0  ;;  %v311_v11 = vrot.slane %v275_v61, 7  ;;  %v276_v10 = vsel %vm936_vm10, %v881_v12, %v240_v49 }
  0x39   :  { %v442_v52 = vsel %vm434_vm7, %v429_v59, %v547_v45  ;;  %562 = vrcp.f32 %v72_v30  ;;  %v382_v13 = vsel %vm334_vm11, 2.0, %v358_v60  ;;  %v214_v15 = vmul.f32 %v551_v62, %v720_v21 }
  0x3a   :  { %v455_v4 = vsel %vm447_vm9, %v442_v52, %v404_v37  ;;  %v359_v17 = vrot.slane %v287_v9, 7  ;;  %vm335_vm12 = vcmp.gt.f32.partialorder %v854_v54, %v311_v11  ;;  %v288_v20 = vsel %vm936_vm10, 1.0, %v567_v19 }
  0x3b   :  { %v553_v2 = vpop.eup %552  ;;  %467 = vst [vmem:[%s990_s3 + $0x38] sm:$0x3f] %v455_v4  ;;  %v312_v24 = vrot.slane %v276_v10, 7  ;;  %v406_v21 = vrot.slane %v382_v13, 2  ;;  %v360_v23 = vrot.slane %v288_v20, 7 }
  0x3c   :  { %v555_v5 = vpop.eup %554  ;;  %v141_v7 = vadd.f32 %v553_v2, %v663_v53  ;;  %v383_v29 = vsel %vm335_vm12, 2.0, %v359_v17 }
  0x3d   :  { %v73_v6 = vadd.f32 1.0, %v555_v5  ;;  %vm336_vm13 = vcmp.gt.f32.partialorder %v881_v12, %v312_v24  ;;  %v407_v36 = vrot.slane %v383_v29, 2 }
  0x3e   :  { %v430_v50 = vsel %vm421_vm6, %v141_v7, %v213_v63  ;;  %v384_v37 = vsel %vm336_vm13, 2.0, %v360_v23 }
  0x3f   :  { %v443_v14 = vsel %vm434_vm7, %v430_v50, %v553_v2  ;;  %564 = vrcp.f32 %v73_v6  ;;  %v408_v41 = vrot.slane %v384_v37, 2 }
  0x40   :  { %v557_v53 = vpop.eup %556  ;;  %v456_v34 = vsel %vm447_vm9, %v443_v14, %v405_v56 }
  0x41   :  { %v559_v25 = vpop.eup %558  ;;  %468 = vst [vmem:[%s990_s3 + $0x40] sm:$0x3f] %v456_v34  ;;  %v142_v27 = vadd.f32 %v557_v53, %v702_v8 }
  0x42   :  { %v561_v33 = vpop.eup %560  ;;  %v215_v26 = vmul.f32 %v559_v25, %v737_v32 }
  0x43   :  { %v431_v28 = vsel %vm421_vm6, %v142_v27, %v214_v15  ;;  %v563_v19 = vpop.eup %562  ;;  %v216_v38 = vmul.f32 %v561_v33, %v809_v18 }
  0x44   :  { %v444_v54 = vsel %vm434_vm7, %v431_v28, %v557_v53  ;;  %v143_v8 = vadd.f32 %v563_v19, %v726_v22 }
  0x45   :  { %v457_v35 = vsel %vm447_vm9, %v444_v54, %v406_v21 }
  0x46   :  { %469 = vst [vmem:[%s990_s3 + $0x48] sm:$0x3f] %v457_v35  ;;  %v432_v47 = vsel %vm421_vm6, %v143_v8, %v215_v26 }
  0x47   :  { %v445_v32 = vsel %vm434_vm7, %v432_v47, %v563_v19 }
  0x48   :  { %v458_v12 = vsel %vm447_vm9, %v445_v32, %v407_v36 }
  0x49   :  { %v565_v39 = vpop.eup %564  ;;  %470 = vst [vmem:[%s990_s3 + $0x50] sm:$0x3f] %v458_v12 }
  0x4a   :  { %v144_v40 = vadd.f32 %v565_v39, %v753_v16 }
  0x4c   :  { %v433_v22 = vsel %vm421_vm6, %v144_v40, %v216_v38 }
  0x4d   :  { %v446_v42 = vsel %vm434_vm7, %v433_v22, %v565_v39 }
  0x4e   :  { %v459_v43 = vsel %vm447_vm9, %v446_v42, %v408_v41 }
  0x4f   :  { %471 = vst [vmem:[%s990_s3 + $0x58] sm:$0x3f] %v459_v43 }

// kernel: yolo_forward.15
= control target key start
LH: loop header
LB: loop body
LE: loop exit
PB: predicated region body
PF: predicated region fallthrough
CT: control target
= control target key end

     0   :  { %v166_v0 = vmov 0.0|0.0   ;;  %vm167_vm0 = vmmov 0   ;;  %v168_v4 = vmov 0.0   ;;  %v169_v6 = vmov 0   ;;  %s226_s1 = inlined_call_operand.vmem [shape: f32[16,128], index: 1, kind: input, shape index: {}]   ;;  %s227_s2 = inlined_call_operand.vmem [shape: f32[24,1], index: 2, kind: input, shape index: {}]   ;;  %s228_s0 = inlined_call_operand.vmem [shape: f32[24,16], index: 0, kind: input, shape index: {}]   ;;  %s229_s3 = inlined_call_operand.vmem [shape: f32[24,128], index: 3, kind: output, shape index: {}]  }
   0x1   :  { %155 = vmatprep.subr.bf16.mxu0 %v166_v0  ;;  %158 = vmatprep.subr.bf16.mxu1 %v166_v0  ;;  %v17_v1 = vld [vmem:[%s226_s1] sm:$0xff]  ;;  %v18_v2 = vld [vmem:[%s226_s1 + $0x8] sm:$0xff]  ;;  %v21_v7 = vld [vmem:[%s227_s2 + $0x10] sm:$0xff]  ;;  %vm37_vm1 = vcmask 130048  }
   0x2   :  { %v156_v3 = vpack.c.bf16 %v18_v2, %v17_v1  ;;  %146 = vmatprep.mubr.msk.f32.mxu0 %vm167_vm0, %v168_v4  ;;  %149 = vmatprep.mubr.msk.f32.mxu1 %vm167_vm0, %v168_v4  ;;  %v19_v5 = vld [vmem:[%s227_s2] sm:$0xff]  ;;  %v15_v9 = vld [vmem:[%s228_s0 + $0x8] sm:$0xff]  ;;  %v16_v11 = vld [vmem:[%s228_s0 + $0x10] sm:$0xff] }
   0x3   :  { %164 = vset.pattern.permute.xlu0 %v169_v6  ;;  %165 = vset.pattern.permute.xlu1 %v169_v6  ;;  %v14_v8 = vld [vmem:[%s228_s0] sm:$0xff]  ;;  %v20_v10 = vld [vmem:[%s227_s2 + $0x8] sm:$0xff] }
   0x4   :  { %157 = vmatpush3.bf16.msra.mxu0 %v156_v3  ;;  %159 = vmatpush3.bf16.msra.mxu1 %v156_v3 }
   0x5   :  { %24 = vperm.xlu0 %164, %v19_v5   ;;  %34 = vperm.xlu1 %165, %v21_v7  }
   0x7   :  { %147 = vmatmul.mubr.msk.f32.vlgmr.msra.gmra.mrb[0].mxu0 %vm37_vm1, %v14_v8  ;;  %150 = vmatmul.mubr.msk.f32.vlgmr.msra.gmra.mrb[0].mxu1 %vm37_vm1, %v15_v9 }
   0x8   :  { %152 = vmatprep.mubr.msk.f32.mxu1 %vm167_vm0, %v168_v4 }
   0x9   :  { %29 = vperm.xlu0 %164, %v20_v10  }
   0xb   :  { %153 = vmatmul.mubr.msk.f32.gmra.mrb[2].mxu1 %vm37_vm1, %v16_v11 }
  0x84   :  { %v25_v12 = vpop.permute.xlu0 %24  ;;  %v35_v20 = vpop.permute.xlu1 %34 }
  0x88   :  { %v30_v13 = vpop.permute.xlu0 %29 }
  0xda   :  { %v113_v14 = vpop.f32.mrb[0].mxu0  ;;  %v118_v15 = vpop.f32.mrb[0].mxu1 }
  0xdb   :  { %v114_v16 = vadd.f32 %v113_v14, %v25_v12  ;;  %v119_v17 = vadd.f32 %v118_v15, %v30_v13  ;;  %v151_v18 = vpop.f32.mrb[1].mxu1  ;;  %v148_v19 = vpop.f32.mrb[1].mxu0 }
  0xdd   :  { %127 = vst [vmem:[%s229_s3] sm:$0xff] %v114_v16  ;;  %128 = vst [vmem:[%s229_s3 + $0x8] sm:$0xff] %v119_v17 }
  0xde   :  { %v123_v21 = vpop.f32.mrb[2].mxu1 }
  0xdf   :  { %v124_v22 = vadd.f32 %v123_v21, %v35_v20  ;;  %v154_v23 = vpop.f32.mrb[3].mxu1 }
  0xe1   :  { %129 = vst [vmem:[%s229_s3 + $0x10] sm:$0xff] %v124_v22 }

// kernel: yolo_forward.16
= control target key start
LH: loop header
LB: loop body
LE: loop exit
PB: predicated region body
PF: predicated region fallthrough
CT: control target
= control target key end

     0   :  { %v76_v7 = vlaneseq  ;;  %v211_v9 = vmov 1983009808   ;;  %v212_v33 = vmov 0.0   ;;  %vm155_vm6 = vcmask 1041408   ;;  %s325_s0 = inlined_call_operand.vmem [shape: f32[2,8,192], index: 0, kind: input, shape index: {}]   ;;  %s326_s2 = inlined_call_operand.vmem [shape: f32[1,2,192], index: 2, kind: input, shape index: {}]   ;;  %s327_s1 = inlined_call_operand.vmem [shape: f32[1,2,192], index: 1, kind: input, shape index: {}]   ;;  %s328_s3 = inlined_call_operand.vmem [shape: f32[2,6,192], index: 3, kind: output, shape index: {}]  }
   0x1   :  { %v14_v0 = vld [vmem:[%s325_s0] sm:$0xff]  ;;  %v15_v2 = vld [vmem:[%s325_s0 + $0x8] sm:$0xff]  ;;  %v242_v4 = vld [vmem:[%s325_s0 + $0x10] sm:$0xff]  ;;  %v74_v10 = vunpack.c.l.s4 %v211_v9  ;;  %vm160_vm7 = vcmask 1043456   ;;  %vm165_vm9 = vcmask 1044480   ;;  %vm171_vm11 = vcmask 521216  }
   0x2   :  { %v179_v1 = vmul.f32 -1.442695, %v14_v0  ;;  %v180_v3 = vmul.f32 -1.442695, %v15_v2  ;;  %v247_v5 = vld [vmem:[%s325_s0 + $0x18] sm:$0xff]  ;;  %v91_v8 = vrot.slane %v14_v0, 7 }
   0x3   :  { %v181_v6 = vmul.f32 -1.442695, %v242_v4  ;;  %v92_v11 = vrot.slane %v15_v2, 7  ;;  %v182_v12 = vmul.f32 -1.442695, %v247_v5  ;;  %v75_v17 = vunpack.c.0.s8 %v74_v10 }
   0x4   :  { %187 = vpow2.f32 %v179_v1  ;;  %v62_v13 = vmul.f32 1.442695, %v14_v0  ;;  %v64_v14 = vmul.f32 1.442695, %v15_v2  ;;  %vm251_vm0 = vcmp.gt.f32.partialorder %v14_v0, %v91_v8  ;;  %v186_v27 = vld [vmem:[%s326_s2] ss:$0 sps:$4 sm:$0xff]  }
   0x5   :  { %189 = vpow2.f32 %v180_v3  ;;  %v77_v18 = vshrl.u32 %v76_v7, 7  ;;  %vm255_vm1 = vcmp.gt.f32.partialorder %v15_v2, %v92_v11  ;;  %v93_v21 = vrot.slane %v242_v4, 7  ;;  %v183_v40 = vld.sshfl [vmem:[%s327_s1] sm:$0x33 pattern:$0x76325410] }
   0x6   :  { %191 = vpow2.f32 %v181_v6  ;;  %v103_v23 = vsel %vm251_vm0, %v14_v0, %v91_v8  ;;  %v104_v25 = vsel %vm255_vm1, %v15_v2, %v92_v11  ;;  %v66_v26 = vmul.f32 1.442695, %v242_v4 }
   0x7   :  { %193 = vpow2.f32 %v182_v12  ;;  %v78_v28 = vsub.s32 %v75_v17, %v77_v18  ;;  %v68_v29 = vmul.f32 1.442695, %v247_v5  ;;  %v94_v30 = vrot.slane %v247_v5, 7 }
   0x8   :  { %195 = vpow2.f32 %v62_v13  ;;  %vm271_vm2 = vcmp.gt.f32.partialorder %v242_v4, %v93_v21  ;;  %v107_v34 = vsel %vm251_vm0, 1.0, %v212_v33  ;;  %v115_v35 = vrot.slane %v103_v23, 7 }
   0x9   :  { %197 = vpow2.f32 %v64_v14  ;;  %v108_v36 = vsel %vm255_vm1, 1.0, %v212_v33  ;;  %v116_v37 = vrot.slane %v104_v25, 7  ;;  %v79_v41 = vrot.slane %v186_v27, %v78_v28 }
   0xa   :  { %v105_v42 = vsel %vm271_vm2, %v242_v4, %v93_v21  ;;  %vm286_vm3 = vcmp.gt.f32.partialorder %v247_v5, %v94_v30  ;;  %v131_v44 = vrot.slane %v107_v34, 7  ;;  %v132_v45 = vrot.slane %v108_v36, 7 }
   0xb   :  { %vm123_vm4 = vcmp.gt.f32.partialorder %v14_v0, %v115_v35  ;;  %vm124_vm5 = vcmp.gt.f32.partialorder %v15_v2, %v116_v37  ;;  %v109_v47 = vsel %vm271_vm2, 1.0, %v212_v33  ;;  %v117_v49 = vrot.slane %v105_v42, 7 }
   0xc   :  { %v106_v50 = vsel %vm286_vm3, %v247_v5, %v94_v30  ;;  %v51_v52 = vcombine.high %v183_v40, %v183_v40  ;;  %v80_v53 = vcombine.high %v79_v41, %v79_v41  ;;  %v139_v55 = vsel %vm123_vm4, 2.0, %v131_v44 }
   0xd   :  { %v140_v56 = vsel %vm124_vm5, 2.0, %v132_v45  ;;  %v133_v57 = vrot.slane %v109_v47, 7  ;;  %v110_v60 = vsel %vm286_vm3, 1.0, %v212_v33  ;;  %v118_v61 = vrot.slane %v106_v50, 7 }
   0xe   :  { %v188_v16 = vpop.eup %187  ;;  %vm125_vm8 = vcmp.gt.f32.partialorder %v242_v4, %v117_v49  ;;  %v147_v0 = vrot.slane %v139_v55, 2  ;;  %v148_v6 = vrot.slane %v140_v56, 2  ;;  %v134_v7 = vrot.slane %v110_v60, 7 }
   0xf   :  { %v30_v20 = vadd.f32 1.0, %v188_v16  ;;  %v190_v22 = vpop.eup %189  ;;  %v141_v11 = vsel %vm125_vm8, 2.0, %v133_v57  ;;  %vm126_vm10 = vcmp.gt.f32.partialorder %v247_v5, %v118_v61 }
  0x10   :  { %v31_v24 = vadd.f32 1.0, %v190_v22  ;;  %v192_v32 = vpop.eup %191  ;;  %v149_v19 = vrot.slane %v141_v11, 2 }
  0x11   :  { %199 = vrcp.f32 %v30_v20  ;;  %v32_v38 = vadd.f32 1.0, %v192_v32  ;;  %v194_v39 = vpop.eup %193  ;;  %v142_v20 = vsel %vm126_vm10, 2.0, %v134_v7 }
  0x12   :  { %201 = vrcp.f32 %v31_v24  ;;  %v33_v46 = vadd.f32 1.0, %v194_v39  ;;  %v196_v48 = vpop.eup %195 }
  0x13   :  { %203 = vpow2.f32 %v66_v26  ;;  %v198_v51 = vpop.eup %197  ;;  %v83_v59 = vmul.f32 %v196_v48, %v79_v41  ;;  %v150_v26 = vrot.slane %v142_v20, 2 }
  0x14   :  { %205 = vpow2.f32 %v68_v29  ;;  %v84_v2 = vmul.f32 %v198_v51, %v80_v53 }
  0x15   :  { %207 = vrcp.f32 %v32_v38 }
  0x16   :  { %209 = vrcp.f32 %v33_v46 }
  0x1b   :  { %v200_v54 = vpop.eup %199 }
  0x1c   :  { %v54_v58 = vadd.f32 %v200_v54, %v183_v40  ;;  %v202_v62 = vpop.eup %201 }
  0x1d   :  { %v55_v1 = vadd.f32 %v202_v62, %v51_v52  ;;  %v204_v3 = vpop.eup %203 }
  0x1e   :  { %v58_v63 = vmul.f32 2.0, %v54_v58  ;;  %v206_v8 = vpop.eup %205  ;;  %v85_v16 = vmul.f32 %v204_v3, %v79_v41 }
  0x1f   :  { %v59_v10 = vmul.f32 2.0, %v55_v1  ;;  %v208_v12 = vpop.eup %207  ;;  %v86_v23 = vmul.f32 %v206_v8, %v80_v53 }
  0x20   :  { %v156_v9 = vsel %vm155_vm6, %v58_v63, %v83_v59  ;;  %v56_v15 = vadd.f32 %v208_v12, %v183_v40  ;;  %v210_v17 = vpop.eup %209 }
  0x21   :  { %v161_v13 = vsel %vm160_vm7, %v156_v9, %v200_v54  ;;  %v157_v14 = vsel %vm155_vm6, %v59_v10, %v84_v2  ;;  %v57_v22 = vadd.f32 %v210_v17, %v51_v52 }
  0x22   :  { %v166_v4 = vsel %vm165_vm9, %v161_v13, %v147_v0  ;;  %v162_v18 = vsel %vm160_vm7, %v157_v14, %v202_v62  ;;  %v60_v21 = vmul.f32 2.0, %v56_v15 }
  0x23   :  { %170 = vst [vmem:[%s328_s3] sm:$0x3f] %v166_v4  ;;  %v167_v5 = vsel %vm165_vm9, %v162_v18, %v148_v6  ;;  %v61_v25 = vmul.f32 2.0, %v57_v22 }
  0x24   :  { %172 = vst.msk [vmem:[%s328_s3 + $0x8] sm:$0x3f] %vm171_vm11, %v167_v5  ;;  %v158_v24 = vsel %vm155_vm6, %v60_v21, %v85_v16 }
  0x25   :  { %v163_v27 = vsel %vm160_vm7, %v158_v24, %v208_v12  ;;  %v159_v29 = vsel %vm155_vm6, %v61_v25, %v86_v23 }
  0x26   :  { %v168_v28 = vsel %vm165_vm9, %v163_v27, %v149_v19  ;;  %v164_v30 = vsel %vm160_vm7, %v159_v29, %v210_v17 }
  0x27   :  { %173 = vst [vmem:[%s328_s3 + $0x10] sm:$0x3f] %v168_v28  ;;  %v169_v31 = vsel %vm165_vm9, %v164_v30, %v150_v26 }
  0x28   :  { %174 = vst.msk [vmem:[%s328_s3 + $0x18] sm:$0x3f] %vm171_vm11, %v169_v31 }

</bundles_post_ra>
